<compile_context>
chip_gen: v7x
topology: tpu7x:2x2x1
jax: 0.10.0
libtpu: 0.0.40
codegen_flags: <defaults>
</compile_context>

<pallas_src>
import functools
import math

import jax
import jax.numpy as jnp
from jax.experimental import pallas as pl
from jax.experimental.pallas import tpu as pltpu

EPS = 1e-10
BN_EPS = 1e-5
LANE = 128
DEFAULT_TM_TARGET = 512


def _round_up(x, m):
    return ((x + m - 1) // m) * m


def _cdiv(a, b):
    return -(-a // b)


def _nbytes(shape, dtype):
    return math.prod(shape) * jnp.dtype(dtype).itemsize


def _vmem_cap_bytes():
    """Per-TensorCore VMEM capacity; conservative v7x value if unknown."""
    try:
        info = pltpu.get_tpu_info()
        cap = getattr(info, "vmem_capacity_bytes", None)
        if cap:
            return int(cap)
    except Exception:
        pass
    return 64 << 20


def _vmem_limit(streamed_bytes, resident_bytes):
    """Double-buffered streamed blocks + resident weights/scratch + slack,
    capped below the physical per-core VMEM of the current generation."""
    cap = _vmem_cap_bytes()
    est = 2 * streamed_bytes + resident_bytes + (4 << 20)
    return int(min(max(est, 32 << 20), cap - (8 << 20)))


# --------------------------------------------------------------------------
# Probe (once) whether single-buffered resident weights are supported.
# --------------------------------------------------------------------------
_BUFFERED_ONE_CACHE = []


def _buffered_one():
    if not _BUFFERED_ONE_CACHE:
        pmode = None
        try:
            pmode = pl.Buffered(1)

            def _probe(a_ref, c_ref, o_ref):
                o_ref[...] = a_ref[...] + c_ref[...]

            with jax.ensure_compile_time_eval():
                f = pl.pallas_call(
                    _probe,
                    grid=(2,),
                    in_specs=[
                        pl.BlockSpec((8, LANE), lambda i: (i, 0)),
                        pl.BlockSpec((8, LANE), lambda i: (0, 0),
                                     pipeline_mode=pmode),
                    ],
                    out_specs=pl.BlockSpec((8, LANE), lambda i: (i, 0)),
                    out_shape=jax.ShapeDtypeStruct((16, LANE), jnp.float32),
                )
                jax.block_until_ready(
                    f(jnp.ones((16, LANE), jnp.float32),
                      jnp.ones((8, LANE), jnp.float32)))
        except Exception:
            pmode = None
        _BUFFERED_ONE_CACHE.append(pmode)
    return _BUFFERED_ONE_CACHE[0]


def _const_spec(shape, pmode):
    """BlockSpec for a VMEM-resident (never re-indexed) weight/bias."""
    idx = lambda *args: (0,) * len(shape)
    if pmode is not None:
        return pl.BlockSpec(shape, idx, pipeline_mode=pmode)
    return pl.BlockSpec(shape, idx)


def _pick_tm(cells, tm_target):
    """Tile size near tm_target that minimizes cells padding (multiple of 8)."""
    tm_cap = _round_up(cells, 8)
    tm_target = max(8, min(int(tm_target), tm_cap))
    n0 = _cdiv(cells, tm_target)
    tm = _round_up(_cdiv(cells, n0), 8)
    return tm, _cdiv(cells, tm)


# --------------------------------------------------------------------------
# Shared decode math: fc21 + softmax + (m_layer folded into fc_dec1) + fc_dec3.
# --------------------------------------------------------------------------
def _decode_math(hb, w21t, b21, wfoldt, bfold, wd3t, bd3, approx_recip):
    cdt = w21t.dtype
    logits = jnp.dot(hb.astype(cdt), w21t,
                     preferred_element_type=jnp.float32) + b21
    logits = logits - jnp.max(logits, axis=-1, keepdims=True)
    e = jnp.exp(logits)
    denom = jnp.sum(e, axis=-1, keepdims=True)
    if approx_recip:
        w = e * pl.reciprocal(denom, approx=True)
    else:
        w = e / denom
    d1 = jnp.dot(w.astype(cdt), wfoldt,
                 preferred_element_type=jnp.float32) + bfold
    d1 = jnp.maximum(d1, 0.0)
    out = jnp.dot(d1.astype(cdt), wd3t,
                  preferred_element_type=jnp.float32) + bd3
    return jnp.maximum(out, 0.0), w


# --------------------------------------------------------------------------
# Two-pass path, pass 1: fc1 + per-tile BatchNorm partial statistics.
# --------------------------------------------------------------------------
def _fc1_stats_kernel(x_ref, w1t_ref, b1_ref, h_ref, sum_ref, m2_ref,
                      *, n_valid, tm):
    i = pl.program_id(0)
    cdt = w1t_ref.dtype

    h = jnp.dot(x_ref[...].astype(cdt), w1t_ref[...],
                preferred_element_type=jnp.float32) + b1_ref[...]

    row = i * tm + jax.lax.broadcasted_iota(jnp.int32, (tm, 1), 0)
    mask = row < n_valid
    # Round-trip through the storage dtype so the BN statistics describe
    # exactly the values pass 2 will read back.
    hq = jnp.where(mask, h, 0.0).astype(h_ref.dtype)
    h_ref[...] = hq
    hf = hq.astype(jnp.float32)

    cnt = jnp.maximum(jnp.minimum(n_valid - i * tm, tm), 1).astype(jnp.float32)
    tile_sum = jnp.sum(hf, axis=0, keepdims=True)
    tile_mean = tile_sum / cnt
    dev = jnp.where(mask, hf - tile_mean, 0.0)
    tile_m2 = jnp.sum(dev * dev, axis=0, keepdims=True)

    # Per-tile partial outputs (distinct blocks -> safe under "parallel").
    sum_ref[...] = jnp.broadcast_to(tile_sum, sum_ref.shape)
    m2_ref[...] = jnp.broadcast_to(tile_m2, m2_ref.shape)


# --------------------------------------------------------------------------
# Two-pass path, pass 2: BN apply + ReLU + fc21 + softmax + folded decoder.
# apply_correction with num_batches == 1 is the IdentityLayer -> no-op.
# --------------------------------------------------------------------------
def _decode_kernel(h_ref, scale_ref, shift_ref, w21t_ref, b21_ref,
                   wfoldt_ref, bfold_ref, wd3t_ref, bd3_ref,
                   out_ref, w_ref, *, approx_recip):
    hb = jnp.maximum(
        h_ref[...].astype(jnp.float32) * scale_ref[...] + shift_ref[...], 0.0)
    out, w = _decode_math(hb, w21t_ref[...], b21_ref[...], wfoldt_ref[...],
                          bfold_ref[...], wd3t_ref[...], bd3_ref[...],
                          approx_recip)
    out_ref[...] = out.astype(out_ref.dtype)
    w_ref[...] = w.astype(w_ref.dtype)


# --------------------------------------------------------------------------
# Fused single-call path: phase 0 = fc1 + stats into VMEM scratch,
# phase 1 = BN + decode.  Used when h + weights fit comfortably in VMEM.
# --------------------------------------------------------------------------
def _fused_kernel(x_ref, w1t_ref, b1_ref, gamma_ref, beta_ref,
                  w21t_ref, b21_ref, wfoldt_ref, bfold_ref, wd3t_ref, bd3_ref,
                  out_ref, w_ref,
                  h_sc, mean_sc, m2_sc,
                  *, n_valid, tm, approx_recip):
    p = pl.program_id(0)
    i = pl.program_id(1)
    cdt = w1t_ref.dtype

    @pl.when(p == 0)
    def _encode_phase():
        h = jnp.dot(x_ref[...].astype(cdt), w1t_ref[...],
                    preferred_element_type=jnp.float32) + b1_ref[...]
        row = i * tm + jax.lax.broadcasted_iota(jnp.int32, (tm, 1), 0)
        mask = row < n_valid
        h = jnp.where(mask, h, 0.0)
        h_sc[i] = h

        cnt = jnp.maximum(jnp.minimum(n_valid - i * tm, tm), 1).astype(jnp.float32)
        tile_mean = jnp.sum(h, axis=0, keepdims=True) / cnt
        dev = jnp.where(mask, h - tile_mean, 0.0)
        tile_m2 = jnp.sum(dev * dev, axis=0, keepdims=True)

        @pl.when(i == 0)
        def _():
            mean_sc[...] = tile_mean
            m2_sc[...] = tile_m2

        @pl.when(i > 0)
        def _():
            # Chan parallel-variance merge (only the last tile can be partial,
            # so all previous tiles contribute exactly i*tm rows).
            cnt_prev = (i * tm).astype(jnp.float32)
            tot = cnt_prev + cnt
            delta = tile_mean - mean_sc[...]
            mean_sc[...] = mean_sc[...] + delta * (cnt / tot)
            m2_sc[...] = m2_sc[...] + tile_m2 + delta * delta * (cnt_prev * cnt / tot)

    @pl.when(p == 1)
    def _decode_phase():
        var = jnp.maximum(m2_sc[...] / jnp.float32(n_valid), 0.0)
        scale = gamma_ref[...] * jax.lax.rsqrt(var + BN_EPS)
        shift = beta_ref[...] - mean_sc[...] * scale
        hb = jnp.maximum(h_sc[i] * scale + shift, 0.0)
        out, w = _decode_math(hb, w21t_ref[...], b21_ref[...], wfoldt_ref[...],
                              bfold_ref[...], wd3t_ref[...], bd3_ref[...],
                              approx_recip)
        out_ref[...] = out.astype(out_ref.dtype)
        w_ref[...] = w.astype(w_ref.dtype)


# --------------------------------------------------------------------------
# Wrapper
# --------------------------------------------------------------------------
def uncurlnetw_forward(x, params, *, tm_target=DEFAULT_TM_TARGET,
                       compute_dtype=jnp.bfloat16, mode="auto"):
    """Fused forward pass. Returns (decode(mu), w) like the nn.Module."""
    cells, genes = x.shape
    hidden = params["w1"].shape[0]
    k = params["w21"].shape[0]
    dec_h = params["wd1"].shape[0]

    cdt = jnp.dtype(compute_dtype)
    fdt = jnp.float32
    odt = cdt                                   # outputs stored in compute dtype
    approx_recip = (cdt != jnp.dtype(jnp.float32))

    hidden_pad = _round_up(max(hidden, LANE), LANE)
    k_pad = _round_up(max(k, LANE), LANE)
    dec_h_pad = _round_up(max(dec_h, LANE), LANE)

    # ---- host-side weight prep: pre-transposed, lane-dense, compute dtype ----
    w1t = jnp.zeros((genes, hidden_pad), fdt).at[:, :hidden].set(
        params["w1"].T).astype(cdt)
    b1 = jnp.zeros((1, hidden_pad), fdt).at[:, :hidden].set(params["b1"])
    gamma = jnp.ones((1, hidden_pad), fdt).at[:, :hidden].set(params["gamma"])
    beta = jnp.zeros((1, hidden_pad), fdt).at[:, :hidden].set(params["beta"])

    w21t = jnp.zeros((hidden_pad, k_pad), fdt).at[:hidden, :k].set(
        params["w21"].T).astype(cdt)
    b21 = jnp.full((1, k_pad), -1e30, fdt).at[:, :k].set(params["b21"])

    # Fold m_layer into fc_dec1 (exact: no nonlinearity between them):
    #   Wfold = wd1 @ M, bfold = bd1 + EPS * rowsum(wd1)
    wfold = jnp.dot(params["wd1"], params["m"])                 # (dec_h, k)
    wfoldt = jnp.zeros((k_pad, dec_h_pad), fdt).at[:k, :dec_h].set(
        wfold.T).astype(cdt)
    bfold = jnp.zeros((1, dec_h_pad), fdt).at[:, :dec_h].set(
        params["bd1"] + EPS * jnp.sum(params["wd1"], axis=1)[None, :])

    wd3t = jnp.zeros((dec_h_pad, genes), fdt).at[:dec_h, :].set(
        params["wd3"].T).astype(cdt)
    bd3 = params["bd3"].astype(fdt)

    # ---- cells tiling: pad rows only (x keeps its dtype; cast in-kernel) ----
    tm, n_tiles = _pick_tm(cells, tm_target)
    cells_pad = tm * n_tiles
    x_in = x if cells_pad == cells else jnp.pad(x, ((0, cells_pad - cells), (0, 0)))

    pmode = _buffered_one()
    res_mult = 1 if pmode is not None else 2

    wt_bytes = (_nbytes((genes, hidden_pad), cdt)
                + _nbytes((hidden_pad, k_pad), cdt)
                + _nbytes((k_pad, dec_h_pad), cdt)
                + _nbytes((dec_h_pad, genes), cdt)
                + 8 * _nbytes((8, max(hidden_pad, dec_h_pad, k_pad, genes)), fdt))

    fused_scratch = (_nbytes((n_tiles, tm, hidden_pad), fdt)
                     + 2 * _nbytes((8, hidden_pad), fdt))
    fused_streamed = (_nbytes((tm, genes), x.dtype)
                      + _nbytes((tm, genes), odt) + _nbytes((tm, k_pad), odt))
    cap = _vmem_cap_bytes()
    if mode == "auto":
        need = res_mult * wt_bytes + 2 * fused_streamed + fused_scratch + (4 << 20)
        mode = "fused" if need <= min(cap // 2, cap - (16 << 20)) else "two_pass"

    # ====================== fused single-call path ======================
    if mode == "fused":
        out_p, w_p = pl.pallas_call(
            functools.partial(_fused_kernel, n_valid=cells, tm=tm,
                              approx_recip=approx_recip),
            grid=(2, n_tiles),
            in_specs=[
                pl.BlockSpec((tm, genes), lambda p, i: (i * (1 - p), 0)),
                _const_spec((genes, hidden_pad), pmode),
                _const_spec((1, hidden_pad), pmode),
                _const_spec((1, hidden_pad), pmode),
                _const_spec((1, hidden_pad), pmode),
                _const_spec((hidden_pad, k_pad), pmode),
                _const_spec((1, k_pad), pmode),
                _const_spec((k_pad, dec_h_pad), pmode),
                _const_spec((1, dec_h_pad), pmode),
                _const_spec((dec_h_pad, genes), pmode),
                _const_spec((1, genes), pmode),
            ],
            out_specs=(
                pl.BlockSpec((tm, genes), lambda p, i: (i * p, 0)),
                pl.BlockSpec((tm, k_pad), lambda p, i: (i * p, 0)),
            ),
            out_shape=(
                jax.ShapeDtypeStruct((cells_pad, genes), odt),
                jax.ShapeDtypeStruct((cells_pad, k_pad), odt),
            ),
            scratch_shapes=[
                pltpu.VMEM((n_tiles, tm, hidden_pad), fdt),
                pltpu.VMEM((1, hidden_pad), fdt),
                pltpu.VMEM((1, hidden_pad), fdt),
            ],
            compiler_params=pltpu.CompilerParams(
                dimension_semantics=("arbitrary", "arbitrary"),
                vmem_limit_bytes=_vmem_limit(
                    fused_streamed, res_mult * wt_bytes + fused_scratch)),
        )(x_in, w1t, b1, gamma, beta, w21t, b21, wfoldt, bfold, wd3t, bd3)
        return out_p[:cells], w_p[:cells, :k]

    # ========================== two-pass path ===========================
    # Pass 1: fc1 + per-tile partial statistics ("parallel" -> both TCs on v7x).
    p1_streamed = (_nbytes((tm, genes), x.dtype) + _nbytes((tm, hidden_pad), cdt)
                   + 2 * _nbytes((8, hidden_pad), fdt))
    p1_resident = res_mult * (_nbytes((genes, hidden_pad), cdt)
                              + _nbytes((8, hidden_pad), fdt))
    h_p, sums_all, m2_all = pl.pallas_call(
        functools.partial(_fc1_stats_kernel, n_valid=cells, tm=tm),
        grid=(n_tiles,),
        in_specs=[
            pl.BlockSpec((tm, genes), lambda i: (i, 0)),
            _const_spec((genes, hidden_pad), pmode),
            _const_spec((1, hidden_pad), pmode),
        ],
        out_specs=(
            pl.BlockSpec((tm, hidden_pad), lambda i: (i, 0)),
            pl.BlockSpec((8, hidden_pad), lambda i: (i, 0)),
            pl.BlockSpec((8, hidden_pad), lambda i: (i, 0)),
        ),
        out_shape=(
            jax.ShapeDtypeStruct((cells_pad, hidden_pad), cdt),
            jax.ShapeDtypeStruct((n_tiles * 8, hidden_pad), fdt),
            jax.ShapeDtypeStruct((n_tiles * 8, hidden_pad), fdt),
        ),
        compiler_params=pltpu.CompilerParams(
            dimension_semantics=("parallel",),
            vmem_limit_bytes=_vmem_limit(p1_streamed, p1_resident)),
    )(x_in, w1t, b1)

    # Chan parallel-variance combine of the per-tile partials (tiny (T,H) math).
    sums = sums_all[0::8]
    m2s = m2_all[0::8]
    counts = jnp.minimum(
        jnp.float32(cells) - jnp.arange(n_tiles, dtype=jnp.float32) * tm,
        float(tm))[:, None]
    mean = jnp.sum(sums, axis=0, keepdims=True) / jnp.float32(cells)
    tile_means = sums / counts
    m2 = (jnp.sum(m2s, axis=0, keepdims=True)
          + jnp.sum(counts * (tile_means - mean) ** 2, axis=0, keepdims=True))
    var = jnp.maximum(m2 / jnp.float32(cells), 0.0)   # biased (PyTorch training mode)
    scale = gamma * jax.lax.rsqrt(var + BN_EPS)
    shift = beta - mean * scale

    # Pass 2: BN apply + ReLU + fc21 + softmax + folded decoder.
    p2_streamed = (_nbytes((tm, hidden_pad), cdt) + _nbytes((tm, genes), odt)
                   + _nbytes((tm, k_pad), odt))
    p2_resident = res_mult * (wt_bytes - _nbytes((genes, hidden_pad), cdt))
    out_p, w_p = pl.pallas_call(
        functools.partial(_decode_kernel, approx_recip=approx_recip),
        grid=(n_tiles,),
        in_specs=[
            pl.BlockSpec((tm, hidden_pad), lambda i: (i, 0)),
            _const_spec((1, hidden_pad), pmode),
            _const_spec((1, hidden_pad), pmode),
            _const_spec((hidden_pad, k_pad), pmode),
            _const_spec((1, k_pad), pmode),
            _const_spec((k_pad, dec_h_pad), pmode),
            _const_spec((1, dec_h_pad), pmode),
            _const_spec((dec_h_pad, genes), pmode),
            _const_spec((1, genes), pmode),
        ],
        out_specs=(
            pl.BlockSpec((tm, genes), lambda i: (i, 0)),
            pl.BlockSpec((tm, k_pad), lambda i: (i, 0)),
        ),
        out_shape=(
            jax.ShapeDtypeStruct((cells_pad, genes), odt),
            jax.ShapeDtypeStruct((cells_pad, k_pad), odt),
        ),
        compiler_params=pltpu.CompilerParams(
            dimension_semantics=("parallel",),
            vmem_limit_bytes=_vmem_limit(p2_streamed, p2_resident)),
    )(h_p, scale, shift, w21t, b21, wfoldt, bfold, wd3t, bd3)

    return out_p[:cells], w_p[:cells, :k]


# --------------------------------------------------------------------------
# Pure-JAX f32 reference implementing the original (unfused) module semantics.
# --------------------------------------------------------------------------
def uncurlnetw_reference(x, params):
    h = x @ params["w1"].T + params["b1"]
    mean = jnp.mean(h, axis=0, keepdims=True)
    var = jnp.mean((h - mean) ** 2, axis=0, keepdims=True)
    h = (h - mean) * jax.lax.rsqrt(var + BN_EPS) * params["gamma"] + params["beta"]
    h = jnp.maximum(h, 0.0)
    logits = h @ params["w21"].T + params["b21"]
    w = jax.nn.softmax(logits, axis=-1)
    mu = w @ params["m"].T + EPS
    d1 = jnp.maximum(mu @ params["wd1"].T + params["bd1"], 0.0)
    out = jnp.maximum(d1 @ params["wd3"].T + params["bd3"], 0.0)
    return out, w


def make_params(key, genes, k, hidden_units, dec_hidden=400):
    """Deterministic synthetic parameter init (shapes match the nn.Module)."""
    ks = jax.random.split(key, 12)
    u = lambda kk, shape, s: (jax.random.uniform(kk, shape, jnp.float32) * 2 - 1) * s
    return {
        # encoder layer (batch 0): Linear(genes, hidden) + BatchNorm1d(hidden)
        "w1": u(ks[0], (hidden_units, genes), 1.0 / jnp.sqrt(genes)),
        "b1": u(ks[1], (1, hidden_units), 1.0 / jnp.sqrt(genes)),
        "gamma": jnp.ones((1, hidden_units), jnp.float32),
        "beta": jnp.zeros((1, hidden_units), jnp.float32),
        # shared softmax head: Linear(hidden, k)
        "w21": u(ks[2], (k, hidden_units), 1.0 / jnp.sqrt(hidden_units)),
        "b21": u(ks[3], (1, k), 1.0 / jnp.sqrt(hidden_units)),
        # m_layer: Linear(k, genes, bias=False), weight = M (genes x k, non-negative)
        "m": jnp.abs(u(ks[4], (genes, k), 1.0)),
        # decoder: Linear(genes, 400) -> Linear(400, genes)
        "wd1": u(ks[5], (dec_hidden, genes), 1.0 / jnp.sqrt(genes)),
        "bd1": u(ks[6], (1, dec_hidden), 1.0 / jnp.sqrt(genes)),
        "wd3": u(ks[7], (genes, dec_hidden), 1.0 / jnp.sqrt(dec_hidden)),
        "bd3": u(ks[8], (1, genes), 1.0 / jnp.sqrt(dec_hidden)),
    }


if __name__ == "__main__":
    cells, genes, k, hidden_units = 300, 96, 10, 64

    key = jax.random.PRNGKey(0)
    kx, kp = jax.random.split(key)
    # non-negative count-like data, as uncurl expects
    x = jnp.abs(jax.random.normal(kx, (cells, genes), jnp.float32)) * 3.0
    params = make_params(kp, genes, k, hidden_units)

    out_gold, w_gold = uncurlnetw_reference(x, params)

    # Probe Buffered(1) support eagerly (outside jit).
    _buffered_one()

    def check(out, w, atol, rtol):
        assert out.shape == (cells, genes) and w.shape == (cells, k)
        assert bool(jnp.allclose(jnp.sum(w.astype(jnp.float32), axis=-1), 1.0, atol=1e-2))
        assert bool(jnp.allclose(out.astype(jnp.float32), out_gold, atol=atol, rtol=rtol))
        assert bool(jnp.allclose(w.astype(jnp.float32), w_gold, atol=atol, rtol=rtol))

    # f32 compute, two-pass, multi-tile: tight check of tiling / stats combine / folding.
    o, w = jax.jit(functools.partial(uncurlnetw_forward, tm_target=128,
                                     compute_dtype=jnp.float32, mode="two_pass"))(x, params)
    jax.block_until_ready((o, w))
    check(o, w, 1e-2, 1e-2)

    # f32 compute, fused single-call path, multi-tile.
    o, w = jax.jit(functools.partial(uncurlnetw_forward, tm_target=128,
                                     compute_dtype=jnp.float32, mode="fused"))(x, params)
    jax.block_until_ready((o, w))
    check(o, w, 1e-2, 1e-2)

    # Default perf configuration: bf16 compute, auto mode (fused at these shapes).
    o, w = jax.jit(uncurlnetw_forward)(x, params)
    jax.block_until_ready((o, w))
    check(o, w, 1e-1, 1e-1)

    # bf16 compute, two-pass, padding-minimizing tile around 256 (tm=152, 2 tiles).
    o, w = jax.jit(functools.partial(uncurlnetw_forward, tm_target=256,
                                     compute_dtype=jnp.bfloat16, mode="two_pass"))(x, params)
    jax.block_until_ready((o, w))
    check(o, w, 1e-1, 1e-1)

    print("KERNEL_OK")
</pallas_src>

<mosaic_0001>
module attributes {stable_mosaic.version = 11 : i64} {
  func.func @_probe(%arg0: i32, %arg1: memref<8x128xf32, #tpu.memory_space<vmem>>, %arg2: memref<8x128xf32, #tpu.memory_space<vmem>>, %arg3: memref<8x128xf32, #tpu.memory_space<vmem>>) attributes {dimension_semantics = [#tpu.dimension_semantics<arbitrary>], iteration_bounds = array<i64: 2>, scalar_prefetch = 0 : i64, scratch_operands = 0 : i64, tpu.core_type = #tpu.core_type<tc>, window_params = [{transform_indices = @transform_0, window_bounds = array<i64: 8, 128>}, {pipeline_mode = #tpu.pipeline_mode<synchronous>, transform_indices = @transform_1, window_bounds = array<i64: 8, 128>}, {transform_indices = @transform_2, window_bounds = array<i64: 8, 128>}]} {
    %c0 = arith.constant 0 : index
    %c0_0 = arith.constant 0 : index
    %0 = vector.load %arg1[%c0, %c0_0] : memref<8x128xf32, #tpu.memory_space<vmem>>, vector<8x128xf32>
    %c0_1 = arith.constant 0 : index
    %c0_2 = arith.constant 0 : index
    %1 = vector.load %arg2[%c0_1, %c0_2] : memref<8x128xf32, #tpu.memory_space<vmem>>, vector<8x128xf32>
    %2 = arith.addf %0, %1 : vector<8x128xf32>
    %c0_3 = arith.constant 0 : index
    %c0_4 = arith.constant 0 : index
    %3 = vector.load %arg3[%c0_3, %c0_4] : memref<8x128xf32, #tpu.memory_space<vmem>>, vector<8x128xf32>
    tpu.vector_store %arg3[%c0_3, %c0_4], %2 {strides = array<i32>} : memref<8x128xf32, #tpu.memory_space<vmem>>, vector<8x128xf32>,
    return
  }
  func.func @transform_0(%arg0: i32) -> (i32, i32) {
    %c0_i32 = arith.constant 0 : i32
    %c0_i32_0 = arith.constant 0 : i32
    return %arg0, %c0_i32 : i32, i32
  }
  func.func @transform_1(%arg0: i32) -> (i32, i32) {
    %c0_i32 = arith.constant 0 : i32
    %c0_i32_0 = arith.constant 0 : i32
    %c0_i32_1 = arith.constant 0 : i32
    return %c0_i32, %c0_i32_0 : i32, i32
  }
  func.func @transform_2(%arg0: i32) -> (i32, i32) {
    %c0_i32 = arith.constant 0 : i32
    %c0_i32_0 = arith.constant 0 : i32
    return %arg0, %c0_i32 : i32, i32
  }
}

module attributes {stable_mosaic.version = 11 : i64} {
  func.func @_fc1_stats_kernel(%arg0: i32, %arg1: memref<104x96xf32, #tpu.memory_space<vmem>>, %arg2: memref<96x128xf32, #tpu.memory_space<vmem>>, %arg3: memref<1x128xf32, #tpu.memory_space<vmem>>, %arg4: memref<104x128xf32, #tpu.memory_space<vmem>>, %arg5: memref<8x128xf32, #tpu.memory_space<vmem>>, %arg6: memref<8x128xf32, #tpu.memory_space<vmem>>) attributes {dimension_semantics = [#tpu.dimension_semantics<parallel>], iteration_bounds = array<i64: 3>, scalar_prefetch = 0 : i64, scratch_operands = 0 : i64, tpu.core_type = #tpu.core_type<tc>, window_params = [{transform_indices = @transform_0, window_bounds = array<i64: 104, 96>}, {pipeline_mode = #tpu.pipeline_mode<synchronous>, transform_indices = @transform_1, window_bounds = array<i64: 96, 128>}, {pipeline_mode = #tpu.pipeline_mode<synchronous>, transform_indices = @transform_2, window_bounds = array<i64: 1, 128>}, {transform_indices = @transform_3, window_bounds = array<i64: 104, 128>}, {transform_indices = @transform_4, window_bounds = array<i64: 8, 128>}, {transform_indices = @transform_5, window_bounds = array<i64: 8, 128>}]} {
    %c0 = arith.constant 0 : index
    %c0_0 = arith.constant 0 : index
    %0 = vector.load %arg1[%c0, %c0_0] : memref<104x96xf32, #tpu.memory_space<vmem>>, vector<104x96xf32>
    %c0_1 = arith.constant 0 : index
    %c0_2 = arith.constant 0 : index
    %1 = vector.load %arg2[%c0_1, %c0_2] : memref<96x128xf32, #tpu.memory_space<vmem>>, vector<96x128xf32>
    %cst = arith.constant dense<0.000000e+00> : vector<104x128xf32>
    %2 = tpu.matmul %0, %1, %cst {dimension_numbers = #tpu.dot_dimension_numbers<[1], [0], [0], [1], [0, 0, 1, 1], [], []>} : vector<104x96xf32>, vector<96x128xf32>, vector<104x128xf32> -> vector<104x128xf32>
    %c0_3 = arith.constant 0 : index
    %c0_4 = arith.constant 0 : index
    %3 = vector.load %arg3[%c0_3, %c0_4] : memref<1x128xf32, #tpu.memory_space<vmem>>, vector<1x128xf32>
    %4 = vector.broadcast %3 : vector<1x128xf32> to vector<104x128xf32>
    %5 = arith.addf %2, %4 : vector<104x128xf32>
    %c104_i32 = arith.constant 104 : i32
    %6 = arith.muli %arg0, %c104_i32 : i32
    %7 = tpu.iota {dimensions = array<i32: 0>} : vector<104x1xi32>
    %8 = vector.broadcast %6 : i32 to vector<104x1xi32>
    %9 = arith.addi %8, %7 : vector<104x1xi32>
    %c300_i32 = arith.constant 300 : i32
    %10 = vector.broadcast %c300_i32 : i32 to vector<104x1xi32>
    %11 = arith.cmpi slt, %9, %10 : vector<104x1xi32>
    %cst_5 = arith.constant 0.000000e+00 : f32
    %12 = vector.shape_cast %11 : vector<104x1xi1> to vector<104x1xi1>
    %13 = vector.broadcast %12 : vector<104x1xi1> to vector<104x128xi1>
    %14 = vector.broadcast %cst_5 : f32 to vector<104x128xf32>
    %15 = arith.select %13, %5, %14 : vector<104x128xi1>, vector<104x128xf32>
    %c0_6 = arith.constant 0 : index
    %c0_7 = arith.constant 0 : index
    %16 = vector.load %arg4[%c0_6, %c0_7] : memref<104x128xf32, #tpu.memory_space<vmem>>, vector<104x128xf32>
    tpu.vector_store %arg4[%c0_6, %c0_7], %15 {strides = array<i32>} : memref<104x128xf32, #tpu.memory_space<vmem>>, vector<104x128xf32>,
    %c104_i32_8 = arith.constant 104 : i32
    %17 = arith.muli %arg0, %c104_i32_8 : i32
    %c300_i32_9 = arith.constant 300 : i32
    %18 = arith.subi %c300_i32_9, %17 : i32
    %c104_i32_10 = arith.constant 104 : i32
    %19 = arith.minsi %18, %c104_i32_10 : i32
    %c1_i32 = arith.constant 1 : i32
    %20 = arith.maxsi %19, %c1_i32 : i32
    %21 = arith.sitofp %20 : i32 to f32
    %cst_11 = arith.constant dense<0.000000e+00> : vector<128xf32>
    %22 = vector.multi_reduction <add>, %15, %cst_11 [0] : vector<104x128xf32> to vector<128xf32>
    %23 = vector.shape_cast %22 : vector<128xf32> to vector<1x128xf32>
    %24 = vector.broadcast %21 : f32 to vector<1x128xf32>
    %25 = arith.divf %23, %24 : vector<1x128xf32>
    %26 = vector.broadcast %25 : vector<1x128xf32> to vector<104x128xf32>
    %27 = arith.subf %15, %26 : vector<104x128xf32>
    %cst_12 = arith.constant 0.000000e+00 : f32
    %28 = vector.shape_cast %11 : vector<104x1xi1> to vector<104x1xi1>
    %29 = vector.broadcast %28 : vector<104x1xi1> to vector<104x128xi1>
    %30 = vector.broadcast %cst_12 : f32 to vector<104x128xf32>
    %31 = arith.select %29, %27, %30 : vector<104x128xi1>, vector<104x128xf32>
    %32 = arith.mulf %31, %31 : vector<104x128xf32>
    %cst_13 = arith.constant dense<0.000000e+00> : vector<128xf32>
    %33 = vector.multi_reduction <add>, %32, %cst_13 [0] : vector<104x128xf32> to vector<128xf32>
    %34 = vector.shape_cast %33 : vector<128xf32> to vector<1x128xf32>
    %35 = vector.shape_cast %23 : vector<1x128xf32> to vector<1x128xf32>
    %36 = vector.broadcast %35 : vector<1x128xf32> to vector<8x128xf32>
    %c0_14 = arith.constant 0 : index
    %c0_15 = arith.constant 0 : index
    %37 = vector.load %arg5[%c0_14, %c0_15] : memref<8x128xf32, #tpu.memory_space<vmem>>, vector<8x128xf32>
    tpu.vector_store %arg5[%c0_14, %c0_15], %36 {strides = array<i32>} : memref<8x128xf32, #tpu.memory_space<vmem>>, vector<8x128xf32>,
    %38 = vector.shape_cast %34 : vector<1x128xf32> to vector<1x128xf32>
    %39 = vector.broadcast %38 : vector<1x128xf32> to vector<8x128xf32>
    %c0_16 = arith.constant 0 : index
    %c0_17 = arith.constant 0 : index
    %40 = vector.load %arg6[%c0_16, %c0_17] : memref<8x128xf32, #tpu.memory_space<vmem>>, vector<8x128xf32>
    tpu.vector_store %arg6[%c0_16, %c0_17], %39 {strides = array<i32>} : memref<8x128xf32, #tpu.memory_space<vmem>>, vector<8x128xf32>,
    return
  }
  func.func @transform_0(%arg0: i32) -> (i32, i32) {
    %c0_i32 = arith.constant 0 : i32
    %c0_i32_0 = arith.constant 0 : i32
    return %arg0, %c0_i32 : i32, i32
  }
  func.func @transform_1(%arg0: i32) -> (i32, i32) {
    %c0_i32 = arith.constant 0 : i32
    %c0_i32_0 = arith.constant 0 : i32
    %c0_i32_1 = arith.constant 0 : i32
    return %c0_i32, %c0_i32_0 : i32, i32
  }
  func.func @transform_2(%arg0: i32) -> (i32, i32) {
    %c0_i32 = arith.constant 0 : i32
    %c0_i32_0 = arith.constant 0 : i32
    %c0_i32_1 = arith.constant 0 : i32
    return %c0_i32, %c0_i32_0 : i32, i32
  }
  func.func @transform_3(%arg0: i32) -> (i32, i32) {
    %c0_i32 = arith.constant 0 : i32
    %c0_i32_0 = arith.constant 0 : i32
    return %arg0, %c0_i32 : i32, i32
  }
  func.func @transform_4(%arg0: i32) -> (i32, i32) {
    %c0_i32 = arith.constant 0 : i32
    %c0_i32_0 = arith.constant 0 : i32
    return %arg0, %c0_i32 : i32, i32
  }
  func.func @transform_5(%arg0: i32) -> (i32, i32) {
    %c0_i32 = arith.constant 0 : i32
    %c0_i32_0 = arith.constant 0 : i32
    return %arg0, %c0_i32 : i32, i32
  }
}

module attributes {stable_mosaic.version = 11 : i64} {
  func.func @_decode_kernel(%arg0: i32, %arg1: memref<104x128xf32, #tpu.memory_space<vmem>>, %arg2: memref<1x128xf32, #tpu.memory_space<vmem>>, %arg3: memref<1x128xf32, #tpu.memory_space<vmem>>, %arg4: memref<128x128xf32, #tpu.memory_space<vmem>>, %arg5: memref<1x128xf32, #tpu.memory_space<vmem>>, %arg6: memref<128x512xf32, #tpu.memory_space<vmem>>, %arg7: memref<1x512xf32, #tpu.memory_space<vmem>>, %arg8: memref<512x96xf32, #tpu.memory_space<vmem>>, %arg9: memref<1x96xf32, #tpu.memory_space<vmem>>, %arg10: memref<104x96xf32, #tpu.memory_space<vmem>>, %arg11: memref<104x128xf32, #tpu.memory_space<vmem>>) attributes {dimension_semantics = [#tpu.dimension_semantics<parallel>], iteration_bounds = array<i64: 3>, scalar_prefetch = 0 : i64, scratch_operands = 0 : i64, tpu.core_type = #tpu.core_type<tc>, window_params = [{transform_indices = @transform_0, window_bounds = array<i64: 104, 128>}, {pipeline_mode = #tpu.pipeline_mode<synchronous>, transform_indices = @transform_1, window_bounds = array<i64: 1, 128>}, {pipeline_mode = #tpu.pipeline_mode<synchronous>, transform_indices = @transform_2, window_bounds = array<i64: 1, 128>}, {pipeline_mode = #tpu.pipeline_mode<synchronous>, transform_indices = @transform_3, window_bounds = array<i64: 128, 128>}, {pipeline_mode = #tpu.pipeline_mode<synchronous>, transform_indices = @transform_4, window_bounds = array<i64: 1, 128>}, {pipeline_mode = #tpu.pipeline_mode<synchronous>, transform_indices = @transform_5, window_bounds = array<i64: 128, 512>}, {pipeline_mode = #tpu.pipeline_mode<synchronous>, transform_indices = @transform_6, window_bounds = array<i64: 1, 512>}, {pipeline_mode = #tpu.pipeline_mode<synchronous>, transform_indices = @transform_7, window_bounds = array<i64: 512, 96>}, {pipeline_mode = #tpu.pipeline_mode<synchronous>, transform_indices = @transform_8, window_bounds = array<i64: 1, 96>}, {transform_indices = @transform_9, window_bounds = array<i64: 104, 96>}, {transform_indices = @transform_10, window_bounds = array<i64: 104, 128>}]} {
    %c0 = arith.constant 0 : index
    %c0_0 = arith.constant 0 : index
    %0 = vector.load %arg1[%c0, %c0_0] : memref<104x128xf32, #tpu.memory_space<vmem>>, vector<104x128xf32>
    %c0_1 = arith.constant 0 : index
    %c0_2 = arith.constant 0 : index
    %1 = vector.load %arg2[%c0_1, %c0_2] : memref<1x128xf32, #tpu.memory_space<vmem>>, vector<1x128xf32>
    %2 = vector.broadcast %1 : vector<1x128xf32> to vector<104x128xf32>
    %3 = arith.mulf %0, %2 : vector<104x128xf32>
    %c0_3 = arith.constant 0 : index
    %c0_4 = arith.constant 0 : index
    %4 = vector.load %arg3[%c0_3, %c0_4] : memref<1x128xf32, #tpu.memory_space<vmem>>, vector<1x128xf32>
    %5 = vector.broadcast %4 : vector<1x128xf32> to vector<104x128xf32>
    %6 = arith.addf %3, %5 : vector<104x128xf32>
    %cst = arith.constant 0.000000e+00 : f32
    %7 = vector.broadcast %cst : f32 to vector<104x128xf32>
    %8 = arith.maximumf %6, %7 : vector<104x128xf32>
    %c0_5 = arith.constant 0 : index
    %c0_6 = arith.constant 0 : index
    %9 = vector.load %arg4[%c0_5, %c0_6] : memref<128x128xf32, #tpu.memory_space<vmem>>, vector<128x128xf32>
    %c0_7 = arith.constant 0 : index
    %c0_8 = arith.constant 0 : index
    %10 = vector.load %arg5[%c0_7, %c0_8] : memref<1x128xf32, #tpu.memory_space<vmem>>, vector<1x128xf32>
    %c0_9 = arith.constant 0 : index
    %c0_10 = arith.constant 0 : index
    %11 = vector.load %arg6[%c0_9, %c0_10] : memref<128x512xf32, #tpu.memory_space<vmem>>, vector<128x512xf32>
    %c0_11 = arith.constant 0 : index
    %c0_12 = arith.constant 0 : index
    %12 = vector.load %arg7[%c0_11, %c0_12] : memref<1x512xf32, #tpu.memory_space<vmem>>, vector<1x512xf32>
    %c0_13 = arith.constant 0 : index
    %c0_14 = arith.constant 0 : index
    %13 = vector.load %arg8[%c0_13, %c0_14] : memref<512x96xf32, #tpu.memory_space<vmem>>, vector<512x96xf32>
    %c0_15 = arith.constant 0 : index
    %c0_16 = arith.constant 0 : index
    %14 = vector.load %arg9[%c0_15, %c0_16] : memref<1x96xf32, #tpu.memory_space<vmem>>, vector<1x96xf32>
    %cst_17 = arith.constant dense<0.000000e+00> : vector<104x128xf32>
    %15 = tpu.matmul %8, %9, %cst_17 {dimension_numbers = #tpu.dot_dimension_numbers<[1], [0], [0], [1], [0, 0, 1, 1], [], []>} : vector<104x128xf32>, vector<128x128xf32>, vector<104x128xf32> -> vector<104x128xf32>
    %16 = vector.broadcast %10 : vector<1x128xf32> to vector<104x128xf32>
    %17 = arith.addf %15, %16 : vector<104x128xf32>
    %cst_18 = arith.constant dense<0xFF800000> : vector<104xf32>
    %18 = vector.multi_reduction <maximumf>, %17, %cst_18 [1] : vector<104x128xf32> to vector<104xf32>
    %19 = vector.shape_cast %18 : vector<104xf32> to vector<104x1xf32>
    %20 = vector.broadcast %19 : vector<104x1xf32> to vector<104x128xf32>
    %21 = arith.subf %17, %20 : vector<104x128xf32>
    %22 = math.exp %21 : vector<104x128xf32>
    %cst_19 = arith.constant dense<0.000000e+00> : vector<104xf32>
    %23 = vector.multi_reduction <add>, %22, %cst_19 [1] : vector<104x128xf32> to vector<104xf32>
    %24 = vector.shape_cast %23 : vector<104xf32> to vector<104x1xf32>
    %25 = vector.broadcast %24 : vector<104x1xf32> to vector<104x128xf32>
    %26 = arith.divf %22, %25 : vector<104x128xf32>
    %cst_20 = arith.constant dense<0.000000e+00> : vector<104x512xf32>
    %27 = tpu.matmul %26, %11, %cst_20 {dimension_numbers = #tpu.dot_dimension_numbers<[1], [0], [0], [1], [0, 0, 1, 1], [], []>} : vector<104x128xf32>, vector<128x512xf32>, vector<104x512xf32> -> vector<104x512xf32>
    %28 = vector.broadcast %12 : vector<1x512xf32> to vector<104x512xf32>
    %29 = arith.addf %27, %28 : vector<104x512xf32>
    %cst_21 = arith.constant 0.000000e+00 : f32
    %30 = vector.broadcast %cst_21 : f32 to vector<104x512xf32>
    %31 = arith.maximumf %29, %30 : vector<104x512xf32>
    %cst_22 = arith.constant dense<0.000000e+00> : vector<104x96xf32>
    %32 = tpu.matmul %31, %13, %cst_22 {dimension_numbers = #tpu.dot_dimension_numbers<[1], [0], [0], [1], [0, 0, 1, 1], [], []>} : vector<104x512xf32>, vector<512x96xf32>, vector<104x96xf32> -> vector<104x96xf32>
    %33 = vector.broadcast %14 : vector<1x96xf32> to vector<104x96xf32>
    %34 = arith.addf %32, %33 : vector<104x96xf32>
    %cst_23 = arith.constant 0.000000e+00 : f32
    %35 = vector.broadcast %cst_23 : f32 to vector<104x96xf32>
    %36 = arith.maximumf %34, %35 : vector<104x96xf32>
    %c0_24 = arith.constant 0 : index
    %c0_25 = arith.constant 0 : index
    %37 = vector.load %arg10[%c0_24, %c0_25] : memref<104x96xf32, #tpu.memory_space<vmem>>, vector<104x96xf32>
    tpu.vector_store %arg10[%c0_24, %c0_25], %36 {strides = array<i32>} : memref<104x96xf32, #tpu.memory_space<vmem>>, vector<104x96xf32>,
    %c0_26 = arith.constant 0 : index
    %c0_27 = arith.constant 0 : index
    %38 = vector.load %arg11[%c0_26, %c0_27] : memref<104x128xf32, #tpu.memory_space<vmem>>, vector<104x128xf32>
    tpu.vector_store %arg11[%c0_26, %c0_27], %26 {strides = array<i32>} : memref<104x128xf32, #tpu.memory_space<vmem>>, vector<104x128xf32>,
    return
  }
  func.func @transform_0(%arg0: i32) -> (i32, i32) {
    %c0_i32 = arith.constant 0 : i32
    %c0_i32_0 = arith.constant 0 : i32
    return %arg0, %c0_i32 : i32, i32
  }
  func.func @transform_1(%arg0: i32) -> (i32, i32) {
    %c0_i32 = arith.constant 0 : i32
    %c0_i32_0 = arith.constant 0 : i32
    %c0_i32_1 = arith.constant 0 : i32
    return %c0_i32, %c0_i32_0 : i32, i32
  }
  func.func @transform_2(%arg0: i32) -> (i32, i32) {
    %c0_i32 = arith.constant 0 : i32
    %c0_i32_0 = arith.constant 0 : i32
    %c0_i32_1 = arith.constant 0 : i32
    return %c0_i32, %c0_i32_0 : i32, i32
  }
  func.func @transform_3(%arg0: i32) -> (i32, i32) {
    %c0_i32 = arith.constant 0 : i32
    %c0_i32_0 = arith.constant 0 : i32
    %c0_i32_1 = arith.constant 0 : i32
    return %c0_i32, %c0_i32_0 : i32, i32
  }
  func.func @transform_4(%arg0: i32) -> (i32, i32) {
    %c0_i32 = arith.constant 0 : i32
    %c0_i32_0 = arith.constant 0 : i32
    %c0_i32_1 = arith.constant 0 : i32
    return %c0_i32, %c0_i32_0 : i32, i32
  }
  func.func @transform_5(%arg0: i32) -> (i32, i32) {
    %c0_i32 = arith.constant 0 : i32
    %c0_i32_0 = arith.constant 0 : i32
    %c0_i32_1 = arith.constant 0 : i32
    return %c0_i32, %c0_i32_0 : i32, i32
  }
  func.func @transform_6(%arg0: i32) -> (i32, i32) {
    %c0_i32 = arith.constant 0 : i32
    %c0_i32_0 = arith.constant 0 : i32
    %c0_i32_1 = arith.constant 0 : i32
    return %c0_i32, %c0_i32_0 : i32, i32
  }
  func.func @transform_7(%arg0: i32) -> (i32, i32) {
    %c0_i32 = arith.constant 0 : i32
    %c0_i32_0 = arith.constant 0 : i32
    %c0_i32_1 = arith.constant 0 : i32
    return %c0_i32, %c0_i32_0 : i32, i32
  }
  func.func @transform_8(%arg0: i32) -> (i32, i32) {
    %c0_i32 = arith.constant 0 : i32
    %c0_i32_0 = arith.constant 0 : i32
    %c0_i32_1 = arith.constant 0 : i32
    return %c0_i32, %c0_i32_0 : i32, i32
  }
  func.func @transform_9(%arg0: i32) -> (i32, i32) {
    %c0_i32 = arith.constant 0 : i32
    %c0_i32_0 = arith.constant 0 : i32
    return %arg0, %c0_i32 : i32, i32
  }
  func.func @transform_10(%arg0: i32) -> (i32, i32) {
    %c0_i32 = arith.constant 0 : i32
    %c0_i32_0 = arith.constant 0 : i32
    return %arg0, %c0_i32 : i32, i32
  }
}

</mosaic_0001>

<bundles_post_ra>
// kernel: tpu_custom_call.1
= control target key start
LH: loop header
LB: loop body
LE: loop exit
PB: predicated region body
PF: predicated region fallthrough
CT: control target
= control target key end

     0   :  { %7 = vsyncpa [#allocation3], 0  ;;  %s690_s0 = inlined_call_operand.hbm [shape: f32[16,128], index: 0, kind: input, shape index: {}]   ;;  %s691_s1 = inlined_call_operand.hbm [shape: f32[8,128], index: 1, kind: input, shape index: {}]   ;;  %s692_s2 = inlined_call_operand.hbm [shape: f32[16,128], index: 2, kind: output, shape index: {}]  }
   0x1   :  { %9 = vsyncpa [#allocation3 + $0x1], 0 }
   0x2   :  { %10 = vsyncpa [#allocation6], 0 }
   0x3   :  { %11 = vsyncpa [#allocation4], 0 }
   0x4   :  { %13 = vsyncpa [#allocation4 + $0x1], 0  ;;  %s489_s9 = smov 0   ;;  %s491_s10 = smov 0  }
   0x5   :  { %s493_s11 = smov 0   ;;  %s495_s12 = smov 0  }
   0x6 LB: > { %s510_s13 = sadd.s32 4294967295, %s469_s12   ;;  %s270_s14 = sadd.s32 4294967294, %s469_s12   ;;  %s469_s12 = sphi %s495_s12, %s716_s12   ;;  %s465_s11 = sphi %s493_s11, %s715_s11   ;;  %s461_s10 = sphi %s491_s10, %s714_s10   ;;  %s457_s9 = sphi %s489_s9, %s713_s9  }
   0x7   : > { %p39_p0 = scmp.ne.s32.totalorder %s461_s10, %s457_s9  ;;  %p693_p1 = scmp.eq.s32.totalorder %s510_s13, 0 }
   0x8   : > { %p90_p3 = scmp.eq.s32.totalorder %s270_s14, 1  ;;  %p271_p5 = scmp.ge.s32.totalorder %s469_s12, 1 }
   0x9   : > { %p519_p4 = por %p693_p1, %p39_p0  ;;  %p97_p7 = scmp.lt.s32.totalorder %s469_s12, 3 }
   0xa   : > { %p524_p6 = por %p90_p3, %p39_p0  ;;  %s471_s18 = smov [#allocation5]  }
   0xb   : > { %s696_s15 = scalar_select %p519_p4, 1, 0 }
   0xc   : > { %s697_s16 = scalar_select %p524_p6, 1, 0 }
   0xd   : > { %p529_p8 = pnand %p271_p5, %p97_p7  ;;  %s110_s19 = sshll.u32 %s471_s18, 4  ;;  %s111_s19 = int_to_ptr.vmem [resolvable:$true] %s110_s19 }
   0xe   : > { %s537_s20 = sadd.s32 1, %s469_s12   ;;  %s26_s24 = sadd.s32 1, %s465_s11 }
   0xf   : > { %s698_s17 = scalar_select %p529_p8, 1, 0 }
  0x10   : > { %p292_p10 = pneg %p529_p8  ;;  %s23_s22 = ssub.s32 %s469_s12, %s537_s20 }
  0x11   : > { %p547_p12 = scmp.eq.s32.totalorder %s23_s22, 0  ;;  %s341_s27 = scalar_lea.hbm %s691_s1, 128 }
  0x12   : > { %p541_p11 = pnand %p292_p10, %p693_p1  ;;  %p342_p0 = scmp.ne.s32.totalorder %s691_s1, %s341_s27 }
  0x13   : > { %s700_s23 = scalar_select %p547_p12, 1, 0 }
  0x14   : > { %p343_p3 = pneg %p541_p11  ;;  %p348_p10 = scmp.lt.u32.totalorder %s341_s27, %s691_s1 }
  0x16   : > { %p344_p5 = pnand %p343_p3, %p342_p0 }
  0x18   : > { %p345_p7 = pneg %p344_p5 }
  0x1a   : > { %p350_p9 = pnand %p348_p10, %p345_p7 }
  0x1c   : > { %353 = shalt.err (!%p350_p9)
}
  0x1d   : > { %s354_s4 = scalar_lea.vmem %s111_s19, 128  ;;  %p362_p6 = scmp.lt.s32.totalorder %s111_s19, %s111_s19 }
  0x1e   : > { %p355_p1 = scmp.ne.s32.totalorder %s111_s19, %s354_s4  ;;  %p363_p4 = scmp.lt.s32.totalorder %s354_s4, %s354_s4 }
  0x20   : > { %p357_p2 = pnand %p355_p1, %p343_p3  ;;  %p364_p8 = por %p363_p4, %p362_p6 }
  0x22   : > { %p358_p13 = pneg %p357_p2 }
  0x24   : > { %p365_p12 = pnand %p364_p8, %p358_p13 }
  0x26   : > { %368 = shalt.err (!%p365_p12)
}
  0x27   : > { %295 = dma.hbm_to_vmem [thread:$0]  (!%p541_p11), %s691_s1, 128, %s111_s19, [#allocation6]  }
  0x28   : > { %p701_p1 = scmp.ne.s32.totalorder %s700_s23, 0  ;;  %p34_p2 = scmp.eq.s32.totalorder %s469_s12, 0 }
  0x29   : > { %p702_p4 = scmp.ne.s32.totalorder %s465_s11, %s461_s10  ;;  %p703_p6 = scmp.eq.s32.totalorder %s510_s13, 1 }
  0x2a   : > { %s573_s7 = scalar_select %p701_p1, %s465_s11, %s26_s24  }
  0x2b   : > { %p581_p8 = por %p703_p6, %p702_p4  ;;  %p305_p9 = scmp.lt.s32.totalorder %s469_s12, 2 }
  0x2c   : > { %s121_s14 = sand.u32 1, %s465_s11   ;;  %p705_p12 = pmov %p702_p4 }
  0x2d   : > { %s274_s18 = sshll.u32 %s121_s14, 3  ;;  %s275_s21 = sshll.u32 %s469_s12, 7 }
  0x2e   : > { %p35_p13 = por %p34_p2, %p705_p12  ;;  %s594_s19 = scalar_lea.hbm %s690_s0, %s275_s21 }
  0x2f   : > { %s125_s23 = scalar_lea.vmem [#allocation2], %s274_s18  ;;  %s122_s27 = scalar_lea.sflag [#allocation3], %s121_s14 }
  0x30   : > { %s132_s24 = sshll.u32 %s125_s23, 4  ;;  %p596_p11 = pnand %p305_p9, %p35_p13  ;;  %s600_s24 = int_to_ptr.vmem [resolvable:$true] %s132_s24 }
  0x31   : > { %s369_s28 = scalar_lea.hbm %s594_s19, 128  ;;  %s374_s3 = scalar_lea.hbm %s690_s0, 256 }
  0x32   : > { %p370_p0 = scmp.ne.s32.totalorder %s594_s19, %s369_s28  ;;  %p371_p3 = pneg %p596_p11 }
  0x33   : > { %p375_p10 = scmp.lt.u32.totalorder %s594_s19, %s690_s0  ;;  %p376_p1 = scmp.lt.u32.totalorder %s374_s3, %s369_s28 }
  0x34   : > { %p372_p5 = pnand %p371_p3, %p370_p0  ;;  %p378_p4 = scmp.lt.u32.totalorder %s369_s28, %s594_s19 }
  0x35   : > { %p377_p2 = por %p376_p1, %p375_p10 }
  0x36   : > { %p373_p7 = pneg %p372_p5 }
  0x37   : > { %p379_p6 = por %p378_p4, %p377_p2 }
  0x39   : > { %p380_p9 = pnand %p379_p6, %p373_p7 }
  0x3b   : > { %383 = shalt.err (!%p380_p9)
}
  0x3c   : > { %s384_s6 = scalar_lea.vmem %s600_s24, 128  ;;  %s472_s14 = smov [#allocation2]  }
  0x3d   : > { %p385_p12 = scmp.ne.s32.totalorder %s600_s24, %s384_s6  ;;  %s389_s18 = sshll.u32 %s472_s14, 4  ;;  %s390_s18 = int_to_ptr.vmem [resolvable:$false] %s389_s18 }
  0x3e   : > { %s391_s21 = scalar_lea.vmem %s390_s18, 256  ;;  %p392_p5 = scmp.lt.s32.totalorder %s600_s24, %s390_s18 }
  0x3f   : > { %p387_p13 = pnand %p385_p12, %p371_p3  ;;  %p393_p10 = scmp.lt.s32.totalorder %s391_s21, %s384_s6 }
  0x41   : > { %p388_p0 = pneg %p387_p13  ;;  %p394_p1 = por %p393_p10, %p392_p5 }
  0x43   : > { %p395_p2 = pnand %p394_p1, %p388_p0 }
  0x45   : > { %398 = shalt.err (!%p395_p2)
}
  0x46   : > { %299 = dma.hbm_to_vmem [thread:$0]  (!%p596_p11), %s594_s19, 128, %s600_s24, %s122_s27  }
  0x47   : > { %p707_p7 = scmp.ne.s32.totalorder %s698_s17, 0 }
  0x48   : > { %s630_s22 = sand.u32 (!%p707_p7), 1, %s461_s10   ;;  %p708_p3 = scmp.ne.s32.totalorder (!%p707_p7), %s696_s15, 0 }
  0x49   : > { %141 = sbr.rel (%p707_p7) target bundleno = 109 (0x6d), region = 28  ;;  %s277_s25 = sshll.u32 (!%p707_p7), %s630_s22, 3 }
  0x4a   : > { %s144_s23 = scalar_lea.sflag (!%p707_p7), [#allocation3], %s630_s22  ;;  %s147_s28 = scalar_lea.vmem (!%p707_p7), [#allocation2], %s277_s25 }
  0x50   : > { %444 = dma.done.wait (%p708_p3), %s144_s23, 128  }
  0x51   : > { %446 = vsyncadd (%p708_p3), %s144_s23, 4294967168  ;;  %p709_p4 = scmp.eq.s32.totalorder %s510_s13, 0 }
  0x53   : > { %448 = dma.done.wait (%p709_p4), [#allocation6], 128   ;;  %p710_p11 = pmov %p709_p4 }
  0x54   : > { %s171_s17 = scalar_lea.vmem [#allocation7], %s277_s25  ;;  %s281_s24 = sshll.u32 %s510_s13, 7  ;;  %v172_v0 = vld [vmem:[%s147_s28] sm:$0xff]  ;;  %v173_v1 = vld [vmem:[#allocation5] sm:$0xff] }
  0x55   : > { %450 = vsyncadd (%p710_p11), [#allocation6], 4294967168  ;;  %s190_s19 = sshll.u32 %s171_s17, 4  ;;  %v174_v2 = vadd.f32 %v173_v1, %v172_v0  ;;  %s648_s27 = scalar_lea.hbm %s692_s2, %s281_s24  ;;  %s643_s19 = int_to_ptr.vmem [resolvable:$true] %s190_s19 }
  0x56   : > { %s177_s29 = scalar_lea.sflag [#allocation4], %s630_s22  ;;  %s399_s30 = scalar_lea.vmem %s643_s19, 128 }
  0x57   : > { %175 = vst [vmem:[%s171_s17] sm:$0xff] %v174_v2  ;;  %p400_p6 = scmp.ne.s32.totalorder %s643_s19, %s399_s30  ;;  %s473_s13 = smov [#allocation7]  }
  0x58   : > { %s403_s3 = sshll.u32 %s473_s13, 4  ;;  %s404_s3 = int_to_ptr.vmem [resolvable:$false] %s403_s3 }
  0x59   : > { %p401_p9 = pnand %p400_p6, %p581_p8  ;;  %s405_s4 = scalar_lea.vmem %s404_s3, 256 }
  0x5a   : > { %p406_p13 = scmp.lt.s32.totalorder %s643_s19, %s404_s3  ;;  %p407_p0 = scmp.lt.s32.totalorder %s405_s4, %s399_s30 }
  0x5b   : > { %p402_p12 = pneg %p401_p9 }
  0x5c   : > { %p408_p5 = por %p407_p0, %p406_p13 }
  0x5e   : > { %p409_p10 = pnand %p408_p5, %p402_p12 }
  0x60   : > { %412 = shalt.err (!%p409_p10)
}
  0x61   : > { %s413_s5 = scalar_lea.hbm %s648_s27, 128  ;;  %s417_s18 = scalar_lea.hbm %s692_s2, 256 }
  0x62   : > { %p414_p1 = scmp.ne.s32.totalorder %s648_s27, %s413_s5  ;;  %p418_p3 = scmp.lt.u32.totalorder %s648_s27, %s692_s2 }
  0x63   : > { %p419_p4 = scmp.lt.u32.totalorder %s417_s18, %s413_s5  ;;  %p421_p6 = scmp.lt.u32.totalorder %s413_s5, %s648_s27 }
  0x64   : > { %p415_p2 = pnand %p414_p1, %p581_p8 }
  0x65   : > { %p420_p11 = por %p419_p4, %p418_p3 }
  0x66   : > { %p416_p7 = pneg %p415_p2 }
  0x67   : > { %p422_p9 = por %p421_p6, %p420_p11 }
  0x69   : > { %p423_p12 = pnand %p422_p9, %p416_p7 }
  0x6b   : > { %426 = shalt.err (!%p423_p12)
}
  0x6c   : > { %290 = dma.vmem_to_hbm [thread:$0]  (%p581_p8), %s643_s19, 128, %s648_s27, %s177_s29  }
  0x6d PF: > { %s202_s25 = sand.u32 1, %s457_s9   ;;  %p711_p13 = scmp.ne.s32.totalorder %s697_s16, 0 }
  0x6e   : > { %p712_p0 = scmp.ge.s32.totalorder %s469_s12, 2  ;;  %s203_s23 = scalar_lea.sflag [#allocation4], %s202_s25 }
  0x70   : > { %p301_p5 = pnand %p712_p0, %p711_p13 }
  0x72   : > { %452 = dma.done.wait (!%p301_p5), %s203_s23, 128  }
  0x73   : > { %454 = vsyncadd (!%p301_p5), %s203_s23, 4294967168  ;;  %p16_p10 = scmp.ge.s32.totalorder %s537_s20, 4   ;;  %s713_s9 = smov %s461_s10 }
  0x74   : > { %s714_s10 = smov %s465_s11  ;;  %s715_s11 = smov %s573_s7 }
  0x75   : > { %s716_s12 = smov %s537_s20  ;;  %18 = sbr.rel (!%p16_p10) target bundleno = 6 (0x6), region = 77 }
  0x7c   :  { %208 = vsyncpa [#allocation3], 1 }
  0x7d   :  { %210 = vsyncpa [#allocation3 + $0x1], 1 }
  0x7e   :  { %211 = vsyncpa [#allocation6], 1 }
  0x7f   :  { %212 = vsyncpa [#allocation4], 1 }
  0x80   :  { %214 = vsyncpa [#allocation4 + $0x1], 1 }

// kernel: uncurlnetw_forward.2
= control target key start
LH: loop header
LB: loop body
LE: loop exit
PB: predicated region body
PF: predicated region fallthrough
CT: control target
= control target key end

     0   :  { %s953_s18 = smov 0   ;;  %s1309_s0 = inlined_call_operand.vmem [shape: f32[312,96], index: 0, kind: input, shape index: {}]   ;;  %s1310_s1 = inlined_call_operand.vmem [shape: f32[96,128], index: 1, kind: input, shape index: {}]   ;;  %s1311_s2 = inlined_call_operand.vmem [shape: f32[1,128], index: 2, kind: input, shape index: {}]   ;;  %s1312_s3 = inlined_call_operand.vmem [shape: f32[312,128], index: 3, kind: output, shape index: {0}]   ;;  %s1313_s4 = inlined_call_operand.vmem [shape: f32[24,128], index: 4, kind: output, shape index: {1}]   ;;  %s1314_s5 = inlined_call_operand.vmem [shape: f32[24,128], index: 5, kind: output, shape index: {2}]  }
   0x1 LB: > { %s959_s19 = sadd.s32 4294967295, %s918_s18   ;;  %p753_p0 = scmp.ge.s32.totalorder %s918_s18, 1  ;;  %s918_s18 = sphi %s953_s18, %s16_s18  }
   0x2   : > { %p193_p1 = scmp.lt.s32.totalorder %s918_s18, 4 }
   0x4   : > { %p194_p2 = pnand %p753_p0, %p193_p1 }
   0x5   : > { %v262_v0 = vld [vmem:[%s1310_s1] sm:$0xff] (!%p194_p2)  ;;  %v263_v1 = vld [vmem:[%s1310_s1 + $0x8] sm:$0xff] (!%p194_p2)  ;;  %v264_v2 = vld [vmem:[%s1310_s1 + $0x10] sm:$0xff] (!%p194_p2)  ;;  %v920_v3 = vmov (!%p194_p2), 0.0|0.0   ;;  %vm921_vm0 = vmmov (!%p194_p2), 0   ;;  %v922_v6 = vmov (!%p194_p2), 0.0   ;;  %v452_v33 = vlaneseq (!%p194_p2) }
   0x6   : > { %197 = sbr.rel (%p194_p2) target bundleno = 342 (0x156), region = 32  ;;  %869 = vmatprep.subr.bf16.mxu0 (!%p194_p2), %v920_v3  ;;  %v870_v4 = vpack.c.bf16 (!%p194_p2), %v263_v1, %v262_v0  ;;  %v265_v5 = vld [vmem:[%s1310_s1 + $0x18] sm:$0xff] (!%p194_p2)  ;;  %887 = vmatprep.subr.bf16.mxu1 (!%p194_p2), %v920_v3  ;;  %v266_v8 = vld [vmem:[%s1310_s1 + $0x20] sm:$0xff] (!%p194_p2)  ;;  %v267_v9 = vld [vmem:[%s1310_s1 + $0x28] sm:$0xff] (!%p194_p2)  ;;  %vm281_vm1 = vcmask (!%p194_p2), 785408   ;;  %p241_p6 = scmp.lt.s32.totalorder (!%p194_p2), %s959_s19, 2 }
   0x7   : > { %830 = vmatprep.mubr.msk.f32.mxu0 (!%p194_p2), %vm921_vm0, %v922_v6  ;;  %851 = vmatprep.mubr.msk.f32.mxu1 (!%p194_p2), %vm921_vm0, %v922_v6  ;;  %v873_v7 = vpack.c.bf16 (!%p194_p2), %v265_v5, %v264_v2  ;;  %s229_s7 = smul.u32 (!%p194_p2), 13, %s959_s19  ;;  %v876_v10 = vpack.c.bf16 (!%p194_p2), %v267_v9, %v266_v8  ;;  %v268_v11 = vld [vmem:[%s1310_s1 + $0x30] sm:$0xff] (!%p194_p2)  ;;  %v269_v12 = vld [vmem:[%s1310_s1 + $0x38] sm:$0xff] (!%p194_p2)  ;;  %v270_v14 = vld [vmem:[%s1310_s1 + $0x40] sm:$0xff] (!%p194_p2)  ;;  %v1063_v34 = vshrl.u32 (!%p194_p2), %v452_v33, 7 }
   0x8   : > { %871 = vmatpush3.bf16.msra.mxu0 (!%p194_p2), %v870_v4  ;;  %893 = vmatpush3.bf16.msra.mxu1 (!%p194_p2), %v870_v4  ;;  %v879_v13 = vpack.c.bf16 (!%p194_p2), %v269_v12, %v268_v11  ;;  %v271_v15 = vld [vmem:[%s1310_s1 + $0x48] sm:$0xff] (!%p194_p2)  ;;  %v272_v17 = vld [vmem:[%s1310_s1 + $0x50] sm:$0xff] (!%p194_p2)  ;;  %v273_v18 = vld [vmem:[%s1310_s1 + $0x58] sm:$0xff] (!%p194_p2)  ;;  %s451_s26 = smul.u32 (!%p194_p2), 104, %s959_s19 }
   0x9   : > { %872 = vmatprep.subr.bf16.mxu0 (!%p194_p2), %v920_v3  ;;  %888 = vmatprep.subr.bf16.mxu1 (!%p194_p2), %v920_v3  ;;  %p230_p3 = scmp.lt.s32.totalorder (!%p194_p2), %s229_s7, 38  ;;  %v882_v16 = vpack.c.bf16 (!%p194_p2), %v271_v15, %v270_v14  ;;  %v885_v19 = vpack.c.bf16 (!%p194_p2), %v273_v18, %v272_v17  ;;  %v460_v36 = vadd.s32 (!%p194_p2), 56, %v1063_v34  ;;  %v454_v38 = vadd.s32 (!%p194_p2), 8, %v1063_v34  ;;  %v1082_v41 = vld [vmem:[%s1311_s2] ss:$0 sm:$0xff] (!%p194_p2) }
   0xa   : > { %v1067_v35 = vstv (!%p194_p2), %s451_s26  ;;  %v461_v40 = vadd.s32 (!%p194_p2), 64, %v1063_v34  ;;  %v455_v42 = vadd.s32 (!%p194_p2), 16, %v1063_v34  ;;  %v462_v47 = vadd.s32 (!%p194_p2), 72, %v1063_v34 }
   0xb   : > { %v1072_v37 = vadd.s32 (!%p194_p2), %v1067_v35, %v1063_v34  ;;  %v1076_v39 = vadd.s32 (!%p194_p2), %v1067_v35, %v460_v36  ;;  %v1087_v44 = vadd.s32 (!%p194_p2), %v1067_v35, %v454_v38  ;;  %v456_v52 = vadd.s32 (!%p194_p2), 24, %v1063_v34 }
   0xc   : > { %874 = vmatpush3.bf16.msra.mxu0 (!%p194_p2), %v873_v7  ;;  %894 = vmatpush3.bf16.msra.mxu1 (!%p194_p2), %v873_v7  ;;  %v1091_v46 = vadd.s32 (!%p194_p2), %v1067_v35, %v461_v40  ;;  %v1109_v54 = vadd.s32 (!%p194_p2), %v1067_v35, %v455_v42  ;;  %v1122_v58 = vadd.s32 (!%p194_p2), %v1067_v35, %v462_v47  ;;  %v463_v59 = vadd.s32 (!%p194_p2), 80, %v1063_v34 }
   0xd   : > { %875 = vmatprep.subr.bf16.mxu0 %v920_v3  ;;  %889 = vmatprep.subr.bf16.mxu1 %v920_v3  ;;  %s1316_s7 = smov (!%p230_p3, %s229_s7), 38  ;;  %vm480_vm2 = vcmp.lt.s32.totalorder %v1072_v37, 300  ;;  %vm487_vm3 = vcmp.lt.s32.totalorder %v1076_v39, 300  ;;  %vm481_vm4 = vcmp.lt.s32.totalorder %v1087_v44, 300  ;;  %v1128_v0 = vadd.s32 %v1067_v35, %v456_v52  ;;  %s1320_s19 = smov (!%p241_p6, %s959_s19), 2 }
   0xe   : > { %s754_s22 = sshll.u32 %s1316_s7, 3  ;;  %vm488_vm5 = vcmp.lt.s32.totalorder %v1091_v46, 300  ;;  %vm482_vm6 = vcmp.lt.s32.totalorder %v1109_v54, 300  ;;  %v457_v2 = vadd.s32 32, %v1063_v34  ;;  %vm489_vm7 = vcmp.lt.s32.totalorder %v1122_v58, 300  ;;  %s1204_s7 = ssub.s32 300, %s451_s26 }
   0xf   : > { %s1012_s25 = scalar_lea.vmem %s1309_s0, %s754_s22  ;;  %s1099_s6 = scalar_lea.vmem %s1312_s3, %s754_s22  ;;  %v1148_v7 = vadd.s32 %v1067_v35, %v463_v59  ;;  %v464_v8 = vadd.s32 88, %v1063_v34  ;;  %vm483_vm8 = vcmp.lt.s32.totalorder %v1128_v0, 300  ;;  %v458_v15 = vadd.s32 40, %v1063_v34 }
  0x10   : > { %877 = vmatpush3.bf16.msra.mxu0 %v876_v10  ;;  %895 = vmatpush3.bf16.msra.mxu1 %v876_v10  ;;  %v249_v20 = vld [vmem:[%s1012_s25] sm:$0xff]  ;;  %v256_v21 = vld [vmem:[%s1012_s25 + $0x38] sm:$0xff]  ;;  %v250_v22 = vld [vmem:[%s1012_s25 + $0x8] sm:$0xff]  ;;  %v1159_v14 = vadd.s32 %v1067_v35, %v457_v2  ;;  %p546_p4 = scmp.lt.s32.totalorder %s1204_s7, 104  ;;  %p772_p5 = scmp.gt.s32.totalorder %s1204_s7, 1 }
  0x11   : > { %878 = vmatprep.subr.bf16.mxu0 %v920_v3  ;;  %890 = vmatprep.subr.bf16.mxu1 %v920_v3  ;;  %v257_v23 = vld [vmem:[%s1012_s25 + $0x40] sm:$0xff]  ;;  %v251_v24 = vld [vmem:[%s1012_s25 + $0x10] sm:$0xff]  ;;  %v258_v25 = vld [vmem:[%s1012_s25 + $0x48] sm:$0xff]  ;;  %vm490_vm9 = vcmp.lt.s32.totalorder %v1148_v7, 300  ;;  %s756_s10 = sshll.u32 %s1320_s19, 3 }
  0x12   : > { %v252_v26 = vld [vmem:[%s1012_s25 + $0x18] sm:$0xff]  ;;  %v259_v27 = vld [vmem:[%s1012_s25 + $0x50] sm:$0xff]  ;;  %v253_v28 = vld [vmem:[%s1012_s25 + $0x20] sm:$0xff]  ;;  %vm484_vm10 = vcmp.lt.s32.totalorder %v1159_v14, 300  ;;  %s547_s8 = scalar_select %p546_p4, %s1204_s7, 104 }
  0x13   : > { %v260_v29 = vld [vmem:[%s1012_s25 + $0x58] sm:$0xff]  ;;  %v254_v30 = vld [vmem:[%s1012_s25 + $0x28] sm:$0xff]  ;;  %v261_v31 = vld [vmem:[%s1012_s25 + $0x60] sm:$0xff]  ;;  %s244_s13 = scalar_lea.vmem %s1313_s4, %s756_s10  ;;  %s248_s16 = scalar_lea.vmem %s1314_s5, %s756_s10 }
  0x14   : > { %880 = vmatpush3.bf16.msra.mxu0 %v879_v13  ;;  %896 = vmatpush3.bf16.msra.mxu1 %v879_v13  ;;  %v255_v32 = vld [vmem:[%s1012_s25 + $0x30] sm:$0xff]  ;;  %s1318_s8 = smov (!%p772_p5, %s547_s8), 1 }
  0x15   : > { %881 = vmatprep.subr.bf16.mxu0 %v920_v3  ;;  %891 = vmatprep.subr.bf16.mxu1 %v920_v3  ;;  %s550_s9 = scvt.s32.f32 %s1318_s8 }
  0x18   : > { %883 = vmatpush3.bf16.msra.mxu0 %v882_v16  ;;  %897 = vmatpush3.bf16.msra.mxu1 %v882_v16 }
  0x19   : > { %884 = vmatprep.subr.bf16.mxu0 %v920_v3  ;;  %892 = vmatprep.subr.bf16.mxu1 %v920_v3 }
  0x1c   : > { %886 = vmatpush3.bf16.msra.mxu0 %v885_v19  ;;  %898 = vmatpush3.bf16.msra.mxu1 %v885_v19 }
  0x1f   : > { %831 = vmatmul.mubr.msk.f32.vlgmr.msra.gmra.mrb[0].mxu0 %vm281_vm1, %v249_v20  ;;  %852 = vmatmul.mubr.msk.f32.vlgmr.msra.gmra.mrb[0].mxu1 %vm281_vm1, %v256_v21  ;;  %v1173_v20 = vadd.s32 %v1067_v35, %v464_v8  ;;  %v465_v21 = vadd.s32 96, %v1063_v34 }
  0x20   : > { %833 = vmatprep.mubr.msk.f32.mxu0 %vm921_vm0, %v922_v6  ;;  %854 = vmatprep.mubr.msk.f32.mxu1 %vm921_vm0, %v922_v6 }
  0x21   : > { %vm491_vm11 = vcmp.lt.s32.totalorder %v1173_v20, 300  ;;  %v1198_v33 = vadd.s32 %v1067_v35, %v465_v21 }
  0x23   : > { %834 = vmatmul.mubr.msk.f32.gmra.mrb[2].mxu0 %vm281_vm1, %v250_v22  ;;  %855 = vmatmul.mubr.msk.f32.gmra.mrb[2].mxu1 %vm281_vm1, %v257_v23  ;;  %vm492_vm13 = vcmp.lt.s32.totalorder %v1198_v33, 300 }
  0x24   : > { %836 = vmatprep.mubr.msk.f32.mxu0 %vm921_vm0, %v922_v6  ;;  %857 = vmatprep.mubr.msk.f32.mxu1 %vm921_vm0, %v922_v6 }
  0x27   : > { %837 = vmatmul.mubr.msk.f32.gmra.mrb[4].mxu0 %vm281_vm1, %v251_v24  ;;  %858 = vmatmul.mubr.msk.f32.gmra.mrb[4].mxu1 %vm281_vm1, %v258_v25 }
  0x28   : > { %839 = vmatprep.mubr.msk.f32.mxu0 %vm921_vm0, %v922_v6  ;;  %860 = vmatprep.mubr.msk.f32.mxu1 %vm921_vm0, %v922_v6 }
  0x2b   : > { %840 = vmatmul.mubr.msk.f32.gmra.mrb[6].mxu0 %vm281_vm1, %v252_v26  ;;  %861 = vmatmul.mubr.msk.f32.gmra.mrb[6].mxu1 %vm281_vm1, %v259_v27  ;;  %v1184_v27 = vadd.s32 %v1067_v35, %v458_v15 }
  0x2c   : > { %842 = vmatprep.mubr.msk.f32.mxu0 %vm921_vm0, %v922_v6  ;;  %863 = vmatprep.mubr.msk.f32.mxu1 %vm921_vm0, %v922_v6 }
  0x2d   : > { %vm485_vm12 = vcmp.lt.s32.totalorder %v1184_v27, 300 }
  0x2f   : > { %843 = vmatmul.mubr.msk.f32.gmra.mrb[8].mxu0 %vm281_vm1, %v253_v28  ;;  %864 = vmatmul.mubr.msk.f32.gmra.mrb[8].mxu1 %vm281_vm1, %v260_v29 }
  0x30   : > { %845 = vmatprep.mubr.msk.f32.mxu0 %vm921_vm0, %v922_v6  ;;  %866 = vmatprep.mubr.msk.f32.mxu1 %vm921_vm0, %v922_v6 }
  0x33   : > { %846 = vmatmul.mubr.msk.f32.gmra.mrb[10].mxu0 %vm281_vm1, %v254_v30  ;;  %867 = vmatmul.mubr.msk.f32.gmra.mrb[10].mxu1 %vm281_vm1, %v261_v31  ;;  %v459_v31 = vadd.s32 48, %v1063_v34 }
  0x34   : > { %848 = vmatprep.mubr.msk.f32.mxu0 %vm921_vm0, %v922_v6 }
  0x37   : > { %849 = vmatmul.mubr.msk.f32.gmra.mrb[12].mxu0 %vm281_vm1, %v255_v32 }
  0xf2   : > { %v387_v43 = vpop.f32.mrb[0].mxu0  ;;  %v422_v45 = vpop.f32.mrb[0].mxu1 }
  0xf3   : > { %v388_v48 = vadd.f32 %v1082_v41, %v387_v43  ;;  %v832_v49 = vpop.f32.mrb[1].mxu0  ;;  %v423_v50 = vadd.f32 %v1082_v41, %v422_v45  ;;  %v853_v51 = vpop.f32.mrb[1].mxu1 }
  0xf5   : > { %v1106_v53 = vsel %vm480_vm2, %v388_v48, 0.0  ;;  %v1113_v55 = vsel %vm487_vm3, %v423_v50, 0.0  ;;  %v1219_v48 = vadd.s32 %v1067_v35, %v459_v31 }
  0xf6   : > { %532 = vst [vmem:[%s1099_s6] sm:$0xff] %v1106_v53  ;;  %v392_v56 = vpop.f32.mrb[2].mxu0  ;;  %539 = vst [vmem:[%s1099_s6 + $0x38] sm:$0xff] %v1113_v55  ;;  %v427_v57 = vpop.f32.mrb[2].mxu1 }
  0xf7   : > { %v393_v60 = vadd.f32 %v1082_v41, %v392_v56  ;;  %v835_v61 = vpop.f32.mrb[3].mxu0  ;;  %v428_v62 = vadd.f32 %v1082_v41, %v427_v57  ;;  %v856_v63 = vpop.f32.mrb[3].mxu1  ;;  %vm486_vm14 = vcmp.lt.s32.totalorder %v1219_v48, 300 }
  0xf9   : > { %v1132_v1 = vsel %vm481_vm4, %v393_v60, 0.0  ;;  %v1138_v3 = vsel %vm488_vm5, %v428_v62, 0.0 }
  0xfa   : > { %533 = vst [vmem:[%s1099_s6 + $0x8] sm:$0xff] %v1132_v1  ;;  %v551_v4 = vadd.f32 %v1132_v1, %v1106_v53  ;;  %v397_v5 = vpop.f32.mrb[4].mxu0  ;;  %540 = vst [vmem:[%s1099_s6 + $0x40] sm:$0xff] %v1138_v3  ;;  %v432_v6 = vpop.f32.mrb[4].mxu1 }
  0xfb   : > { %v398_v9 = vadd.f32 %v1082_v41, %v397_v5  ;;  %v838_v10 = vpop.f32.mrb[5].mxu0  ;;  %v433_v11 = vadd.f32 %v1082_v41, %v432_v6  ;;  %v859_v12 = vpop.f32.mrb[5].mxu1 }
  0xfd   : > { %v1156_v13 = vsel %vm482_vm6, %v398_v9, 0.0  ;;  %v1164_v16 = vsel %vm489_vm7, %v433_v11, 0.0  ;;  %v569_v9 = vstv %s550_s9 }
  0xfe   : > { %534 = vst [vmem:[%s1099_s6 + $0x10] sm:$0xff] %v1156_v13  ;;  %v552_v17 = vadd.f32 %v551_v4, %v1156_v13  ;;  %v402_v18 = vpop.f32.mrb[6].mxu0  ;;  %541 = vst [vmem:[%s1099_s6 + $0x48] sm:$0xff] %v1164_v16  ;;  %v437_v19 = vpop.f32.mrb[6].mxu1  ;;  %910 = vrcp.f32 %v569_v9 }
  0xff   : > { %v403_v22 = vadd.f32 %v1082_v41, %v402_v18  ;;  %v841_v23 = vpop.f32.mrb[7].mxu0  ;;  %v438_v24 = vadd.f32 %v1082_v41, %v437_v19  ;;  %v862_v25 = vpop.f32.mrb[7].mxu1 }
 0x101   : > { %v1180_v26 = vsel %vm483_vm8, %v403_v22, 0.0  ;;  %v1188_v28 = vsel %vm490_vm9, %v438_v24, 0.0 }
 0x102   : > { %535 = vst [vmem:[%s1099_s6 + $0x18] sm:$0xff] %v1180_v26  ;;  %v553_v29 = vadd.f32 %v552_v17, %v1180_v26  ;;  %v407_v30 = vpop.f32.mrb[8].mxu0  ;;  %542 = vst [vmem:[%s1099_s6 + $0x50] sm:$0xff] %v1188_v28  ;;  %v442_v32 = vpop.f32.mrb[8].mxu1 }
 0x103   : > { %v408_v36 = vadd.f32 %v1082_v41, %v407_v30  ;;  %v844_v38 = vpop.f32.mrb[9].mxu0  ;;  %v443_v40 = vadd.f32 %v1082_v41, %v442_v32  ;;  %v865_v42 = vpop.f32.mrb[9].mxu1 }
 0x105   : > { %v1208_v34 = vsel %vm484_vm10, %v408_v36, 0.0  ;;  %v1212_v43 = vsel %vm491_vm11, %v443_v40, 0.0 }
 0x106   : > { %536 = vst [vmem:[%s1099_s6 + $0x20] sm:$0xff] %v1208_v34  ;;  %v554_v45 = vadd.f32 %v553_v29, %v1208_v34  ;;  %v412_v47 = vpop.f32.mrb[10].mxu0  ;;  %543 = vst [vmem:[%s1099_s6 + $0x58] sm:$0xff] %v1212_v43  ;;  %v447_v49 = vpop.f32.mrb[10].mxu1 }
 0x107   : > { %v413_v50 = vadd.f32 %v1082_v41, %v412_v47  ;;  %v847_v51 = vpop.f32.mrb[11].mxu0  ;;  %v448_v52 = vadd.f32 %v1082_v41, %v447_v49  ;;  %v868_v56 = vpop.f32.mrb[11].mxu1 }
 0x108   : > { %v911_v19 = vpop.eup %910 }
 0x109   : > { %v1229_v57 = vsel %vm485_vm12, %v413_v50, 0.0  ;;  %v1233_v35 = vsel %vm492_vm13, %v448_v52, 0.0 }
 0x10a   : > { %537 = vst [vmem:[%s1099_s6 + $0x28] sm:$0xff] %v1229_v57  ;;  %v555_v59 = vadd.f32 %v554_v45, %v1229_v57  ;;  %v417_v60 = vpop.f32.mrb[12].mxu0  ;;  %544 = vst [vmem:[%s1099_s6 + $0x60] sm:$0xff] %v1233_v35 }
 0x10b   : > { %v418_v61 = vadd.f32 %v1082_v41, %v417_v60  ;;  %v850_v62 = vpop.f32.mrb[13].mxu0 }
 0x10d   : > { %v525_v63 = vsel %vm486_vm14, %v418_v61, 0.0 }
 0x10e   : > { %538 = vst [vmem:[%s1099_s6 + $0x30] sm:$0xff] %v525_v63  ;;  %v556_v2 = vadd.f32 %v555_v59, %v525_v63 }
 0x110   : > { %v557_v4 = vadd.f32 %v556_v2, %v1113_v55 }
 0x112   : > { %v558_v5 = vadd.f32 %v557_v4, %v1138_v3 }
 0x114   : > { %v559_v6 = vadd.f32 %v558_v5, %v1164_v16 }
 0x116   : > { %v560_v8 = vadd.f32 %v559_v6, %v1188_v28 }
 0x118   : > { %v561_v41 = vadd.f32 %v560_v8, %v1212_v43 }
 0x11a   : > { %v562_v10 = vadd.f32 %v561_v41, %v1233_v35 }
 0x11c   : > { %v563_v11 = vrot.slane %v562_v10, 4 }
 0x11e   : > { %v564_v12 = vadd.f32 %v563_v11, %v562_v10 }
 0x120   : > { %v565_v15 = vrot.slane %v564_v12, 2 }
 0x122   : > { %v566_v17 = vadd.f32 %v565_v15, %v564_v12 }
 0x124   : > { %v567_v18 = vrot.slane %v566_v17, 1 }
 0x126   : > { %v568_v21 = vadd.f32 %v567_v18, %v566_v17 }
 0x128   : > { %v571_v22 = vmul.f32 %v911_v19, %v568_v21  ;;  %629 = vst [vmem:[%s244_s13] sm:$0xff] %v568_v21 }
 0x12a   : > { %v572_v23 = vsub.f32 %v1106_v53, %v571_v22  ;;  %v573_v24 = vsub.f32 %v1132_v1, %v571_v22  ;;  %v574_v25 = vsub.f32 %v1156_v13, %v571_v22  ;;  %v575_v29 = vsub.f32 %v1180_v26, %v571_v22 }
 0x12b   : > { %v576_v30 = vsub.f32 %v1208_v34, %v571_v22  ;;  %v577_v31 = vsub.f32 %v1229_v57, %v571_v22  ;;  %v578_v32 = vsub.f32 %v525_v63, %v571_v22  ;;  %v579_v36 = vsub.f32 %v1113_v55, %v571_v22 }
 0x12c   : > { %v580_v38 = vsub.f32 %v1138_v3, %v571_v22  ;;  %v581_v40 = vsub.f32 %v1164_v16, %v571_v22  ;;  %v582_v42 = vsub.f32 %v1188_v28, %v571_v22  ;;  %v583_v53 = vsub.f32 %v1212_v43, %v571_v22 }
 0x12d   : > { %v584_v1 = vsub.f32 %v1233_v35, %v571_v22  ;;  %v585_v13 = vsel %vm480_vm2, %v572_v23, 0.0  ;;  %v586_v26 = vsel %vm481_vm4, %v573_v24, 0.0  ;;  %v592_v34 = vsel %vm487_vm3, %v579_v36, 0.0 }
 0x12e   : > { %v593_v55 = vsel %vm488_vm5, %v580_v38, 0.0  ;;  %v594_v3 = vsel %vm489_vm7, %v581_v40, 0.0  ;;  %v595_v16 = vsel %vm490_vm9, %v582_v42, 0.0  ;;  %v587_v28 = vsel %vm482_vm6, %v574_v25, 0.0 }
 0x12f   : > { %v598_v37 = vmul.f32 %v585_v13, %v585_v13  ;;  %v599_v43 = vmul.f32 %v586_v26, %v586_v26  ;;  %v588_v44 = vsel %vm483_vm8, %v575_v29, 0.0  ;;  %v600_v45 = vmul.f32 %v587_v28, %v587_v28 }
 0x130   : > { %v589_v46 = vsel %vm484_vm10, %v576_v30, 0.0  ;;  %v601_v47 = vmul.f32 %v588_v44, %v588_v44  ;;  %v590_v58 = vsel %vm485_vm12, %v577_v31, 0.0  ;;  %v591_v54 = vsel %vm486_vm14, %v578_v32, 0.0 }
 0x131   : > { %v611_v39 = vadd.f32 %v599_v43, %v598_v37  ;;  %v602_v7 = vmul.f32 %v589_v46, %v589_v46  ;;  %v603_v51 = vmul.f32 %v590_v58, %v590_v58  ;;  %v604_v56 = vmul.f32 %v591_v54, %v591_v54 }
 0x132   : > { %v605_v57 = vmul.f32 %v592_v34, %v592_v34  ;;  %v606_v59 = vmul.f32 %v593_v55, %v593_v55  ;;  %v607_v14 = vmul.f32 %v594_v3, %v594_v3  ;;  %v596_v27 = vsel %vm491_vm11, %v583_v53, 0.0 }
 0x133   : > { %v612_v49 = vadd.f32 %v611_v39, %v600_v45  ;;  %v608_v62 = vmul.f32 %v595_v16, %v595_v16  ;;  %v597_v48 = vsel %vm492_vm13, %v584_v1, 0.0  ;;  %v609_v2 = vmul.f32 %v596_v27, %v596_v27 }
 0x134   : > { %v610_v5 = vmul.f32 %v597_v48, %v597_v48 }
 0x135   : > { %v613_v50 = vadd.f32 %v612_v49, %v601_v47 }
 0x137   : > { %v614_v52 = vadd.f32 %v613_v50, %v602_v7 }
 0x139   : > { %v615_v0 = vadd.f32 %v614_v52, %v603_v51 }
 0x13b   : > { %v616_v35 = vadd.f32 %v615_v0, %v604_v56 }
 0x13d   : > { %v617_v60 = vadd.f32 %v616_v35, %v605_v57 }
 0x13f   : > { %v618_v61 = vadd.f32 %v617_v60, %v606_v59 }
 0x141   : > { %v619_v63 = vadd.f32 %v618_v61, %v607_v14 }
 0x143   : > { %v620_v4 = vadd.f32 %v619_v63, %v608_v62 }
 0x145   : > { %v621_v6 = vadd.f32 %v620_v4, %v609_v2 }
 0x147   : > { %v622_v8 = vadd.f32 %v621_v6, %v610_v5 }
 0x149   : > { %v623_v41 = vrot.slane %v622_v8, 4 }
 0x14b   : > { %v624_v9 = vadd.f32 %v623_v41, %v622_v8 }
 0x14d   : > { %v625_v10 = vrot.slane %v624_v9, 2 }
 0x14f   : > { %v626_v11 = vadd.f32 %v625_v10, %v624_v9 }
 0x151   : > { %v627_v12 = vrot.slane %v626_v11, 1 }
 0x153   : > { %v628_v20 = vadd.f32 %v627_v12, %v626_v11 }
 0x155   : > { %630 = vst [vmem:[%s248_s16] sm:$0xff] %v628_v20 }
 0x156 PF: > { %s16_s18 = sadd.s32 1, %s918_s18  }
 0x157   : > { %p13_p7 = scmp.ge.s32.totalorder %s16_s18, 5  }
 0x159   :  { %15 = sbr.rel (!%p13_p7) target bundleno = 1 (0x1), region = 86 }

// kernel: uncurlnetw_forward.3
= control target key start
LH: loop header
LB: loop body
LE: loop exit
PB: predicated region body
PF: predicated region fallthrough
CT: control target
= control target key end

     0   :  { %s2151_s13 = smov 0   ;;  %s3012_s0 = inlined_call_operand.vmem [shape: f32[312,128], index: 0, kind: input, shape index: {}]   ;;  %s3013_s1 = inlined_call_operand.vmem [shape: f32[1,128], index: 1, kind: input, shape index: {}]   ;;  %s3014_s2 = inlined_call_operand.vmem [shape: f32[1,128], index: 2, kind: input, shape index: {}]   ;;  %s3015_s3 = inlined_call_operand.vmem [shape: f32[128,128], index: 3, kind: input, shape index: {}]   ;;  %s3016_s4 = inlined_call_operand.vmem [shape: f32[1,128], index: 4, kind: input, shape index: {}]   ;;  %s3017_s5 = inlined_call_operand.vmem [shape: f32[128,512], index: 5, kind: input, shape index: {}]   ;;  %s3018_s6 = inlined_call_operand.vmem [shape: f32[1,512], index: 6, kind: input, shape index: {}]   ;;  %s3019_s7 = inlined_call_operand.vmem [shape: f32[512,96], index: 7, kind: input, shape index: {}]   ;;  %s3020_s8 = inlined_call_operand.vmem [shape: f32[1,96], index: 8, kind: input, shape index: {}]   ;;  %s3021_s9 = inlined_call_operand.vmem [shape: f32[312,96], index: 9, kind: output, shape index: {0}]   ;;  %s3022_s10 = inlined_call_operand.vmem [shape: f32[312,128], index: 10, kind: output, shape index: {1}]  }
   0x1 LB: > { %s1598_s14 = sadd.s32 4294967295, %s2091_s13   ;;  %p1602_p0 = scmp.ge.s32.totalorder %s2091_s13, 1  ;;  %s2091_s13 = sphi %s2151_s13, %s21_s13  }
   0x2   : > { %p316_p1 = scmp.lt.s32.totalorder %s2091_s13, 4 }
   0x4   : > { %p317_p2 = pnand %p1602_p0, %p316_p1 }
   0x5   : > { %v443_v0 = vld [vmem:[%s3015_s3] sm:$0xff] (!%p317_p2)  ;;  %v444_v1 = vld [vmem:[%s3015_s3 + $0x8] sm:$0xff] (!%p317_p2)  ;;  %v445_v2 = vld [vmem:[%s3015_s3 + $0x10] sm:$0xff] (!%p317_p2)  ;;  %v2093_v3 = vmov (!%p317_p2), 0.0|0.0   ;;  %vm2094_vm0 = vmmov (!%p317_p2), 0   ;;  %v2095_v6 = vmov (!%p317_p2), 0.0  }
   0x6   : > { %320 = sbr.rel (%p317_p2) target bundleno = 1075 (0x433), region = 56  ;;  %1854 = vmatprep.subr.bf16.mxu0 (!%p317_p2), %v2093_v3  ;;  %v1855_v4 = vpack.c.bf16 (!%p317_p2), %v444_v1, %v443_v0  ;;  %v446_v5 = vld [vmem:[%s3015_s3 + $0x18] sm:$0xff] (!%p317_p2)  ;;  %1815 = vmatprep.mubr.msk.f32.mxu0 (!%p317_p2), %vm2094_vm0, %v2095_v6  ;;  %v447_v8 = vld [vmem:[%s3015_s3 + $0x20] sm:$0xff] (!%p317_p2)  ;;  %v448_v9 = vld [vmem:[%s3015_s3 + $0x28] sm:$0xff] (!%p317_p2)  ;;  %vm1481_vm1 = vcmask (!%p317_p2), 785408  }
   0x7   : > { %s359_s23 = smul.u32 (!%p317_p2), 13, %s1598_s14  ;;  %928 = vmatprep.mubr.f32.mxu1 (!%p317_p2), %v2095_v6  ;;  %v1858_v7 = vpack.c.bf16 (!%p317_p2), %v446_v5, %v445_v2  ;;  %v1861_v10 = vpack.c.bf16 (!%p317_p2), %v448_v9, %v447_v8  ;;  %v449_v11 = vld [vmem:[%s3015_s3 + $0x30] sm:$0xff] (!%p317_p2)  ;;  %v450_v12 = vld [vmem:[%s3015_s3 + $0x38] sm:$0xff] (!%p317_p2)  ;;  %v451_v14 = vld [vmem:[%s3015_s3 + $0x40] sm:$0xff] (!%p317_p2) }
   0x8   : > { %1856 = vmatpush3.bf16.msra.mxu0 (!%p317_p2), %v1855_v4  ;;  %v1864_v13 = vpack.c.bf16 (!%p317_p2), %v450_v12, %v449_v11  ;;  %v452_v15 = vld [vmem:[%s3015_s3 + $0x48] sm:$0xff] (!%p317_p2)  ;;  %v453_v17 = vld [vmem:[%s3015_s3 + $0x50] sm:$0xff] (!%p317_p2)  ;;  %v454_v18 = vld [vmem:[%s3015_s3 + $0x58] sm:$0xff] (!%p317_p2) }
   0x9   : > { %1857 = vmatprep.subr.bf16.mxu0 (!%p317_p2), %v2093_v3  ;;  %p360_p3 = scmp.lt.s32.totalorder (!%p317_p2), %s359_s23, 38  ;;  %v1867_v16 = vpack.c.bf16 (!%p317_p2), %v452_v15, %v451_v14  ;;  %v1870_v19 = vpack.c.bf16 (!%p317_p2), %v454_v18, %v453_v17  ;;  %v2210_v21 = vld [vmem:[%s3013_s1] ss:$0 sm:$0xff] (!%p317_p2)  ;;  %v456_v23 = vld [vmem:[%s3015_s3 + $0x68] sm:$0xff] (!%p317_p2)  ;;  %v457_v28 = vld [vmem:[%s3015_s3 + $0x70] sm:$0xff] (!%p317_p2) }
   0xa   : > { %v455_v22 = vld [vmem:[%s3015_s3 + $0x60] sm:$0xff] (!%p317_p2)  ;;  %v458_v29 = vld [vmem:[%s3015_s3 + $0x78] sm:$0xff] (!%p317_p2) }
   0xb   : > { %v1873_v25 = vpack.c.bf16 (!%p317_p2), %v456_v23, %v455_v22  ;;  %v2222_v26 = vld [vmem:[%s3014_s2] ss:$0 sm:$0xff] (!%p317_p2)  ;;  %v1876_v32 = vpack.c.bf16 (!%p317_p2), %v458_v29, %v457_v28 }
   0xc   : > { %1859 = vmatpush3.bf16.msra.mxu0 (!%p317_p2), %v1858_v7  ;;  %v1608_v17 = vld [vmem:[%s3016_s4] ss:$0 sm:$0xff] (!%p317_p2) }
   0xd   : > { %1860 = vmatprep.subr.bf16.mxu0 %v2093_v3  ;;  %s3024_s23 = smov (!%p360_p3, %s359_s23), 38 }
   0xe   : > { %s2192_s17 = sshll.u32 %s3024_s23, 3 }
   0xf   : > { %s2204_s25 = scalar_lea.vmem %s3012_s0, %s2192_s17  ;;  %s2621_s11 = scalar_lea.vmem %s3022_s10, %s2192_s17 }
  0x10   : > { %1862 = vmatpush3.bf16.msra.mxu0 %v1861_v10  ;;  %v377_v20 = vld [vmem:[%s2204_s25] sm:$0xff]  ;;  %v378_v27 = vld [vmem:[%s2204_s25 + $0x8] sm:$0xff]  ;;  %v379_v33 = vld [vmem:[%s2204_s25 + $0x10] sm:$0xff] }
  0x11   : > { %1863 = vmatprep.subr.bf16.mxu0 %v2093_v3  ;;  %v397_v24 = vmul.f32 %v2210_v21, %v377_v20  ;;  %v398_v31 = vmul.f32 %v2210_v21, %v378_v27  ;;  %v399_v36 = vmul.f32 %v2210_v21, %v379_v33  ;;  %v380_v37 = vld [vmem:[%s2204_s25 + $0x18] sm:$0xff]  ;;  %v381_v41 = vld [vmem:[%s2204_s25 + $0x20] sm:$0xff]  ;;  %v382_v45 = vld [vmem:[%s2204_s25 + $0x28] sm:$0xff] }
  0x12   : > { %v400_v40 = vmul.f32 %v2210_v21, %v380_v37  ;;  %v401_v44 = vmul.f32 %v2210_v21, %v381_v41  ;;  %v402_v48 = vmul.f32 %v2210_v21, %v382_v45  ;;  %v383_v49 = vld [vmem:[%s2204_s25 + $0x30] sm:$0xff]  ;;  %v384_v53 = vld [vmem:[%s2204_s25 + $0x38] sm:$0xff]  ;;  %v385_v57 = vld [vmem:[%s2204_s25 + $0x40] sm:$0xff] }
  0x13   : > { %v417_v30 = vadd.f32 %v2222_v26, %v397_v24  ;;  %v418_v35 = vadd.f32 %v2222_v26, %v398_v31  ;;  %v419_v39 = vadd.f32 %v2222_v26, %v399_v36  ;;  %v403_v52 = vmul.f32 %v2210_v21, %v383_v49  ;;  %v386_v61 = vld [vmem:[%s2204_s25 + $0x48] sm:$0xff]  ;;  %v387_v1 = vld [vmem:[%s2204_s25 + $0x50] sm:$0xff]  ;;  %v388_v5 = vld [vmem:[%s2204_s25 + $0x58] sm:$0xff] }
  0x14   : > { %1865 = vmatpush3.bf16.msra.mxu0 %v1864_v13  ;;  %v420_v43 = vadd.f32 %v2222_v26, %v400_v40  ;;  %v421_v47 = vadd.f32 %v2222_v26, %v401_v44  ;;  %v422_v51 = vadd.f32 %v2222_v26, %v402_v48  ;;  %v404_v56 = vmul.f32 %v2210_v21, %v384_v53  ;;  %v389_v10 = vld [vmem:[%s2204_s25 + $0x60] sm:$0xff] }
  0x15   : > { %1866 = vmatprep.subr.bf16.mxu0 %v2093_v3  ;;  %v430_v34 = vmax.f32 %v417_v30, 0.0  ;;  %v431_v38 = vmax.f32 %v418_v35, 0.0  ;;  %v432_v42 = vmax.f32 %v419_v39, 0.0  ;;  %v423_v55 = vadd.f32 %v2222_v26, %v403_v52 }
  0x16   : > { %v433_v46 = vmax.f32 %v420_v43, 0.0  ;;  %v434_v50 = vmax.f32 %v421_v47, 0.0  ;;  %v435_v54 = vmax.f32 %v422_v51, 0.0  ;;  %v424_v59 = vadd.f32 %v2222_v26, %v404_v56 }
  0x17   : > { %v436_v58 = vmax.f32 %v423_v55, 0.0  ;;  %v405_v60 = vmul.f32 %v2210_v21, %v385_v57  ;;  %v406_v0 = vmul.f32 %v2210_v21, %v386_v61  ;;  %v407_v4 = vmul.f32 %v2210_v21, %v387_v1  ;;  %v461_v57 = vld [vmem:[%s3017_s5 + $0x8] sm:$0xff]  ;;  %v467_v61 = vld [vmem:[%s3017_s5 + $0x38] sm:$0xff] }
  0x18   : > { %1868 = vmatpush3.bf16.msra.mxu0 %v1867_v16  ;;  %v437_v62 = vmax.f32 %v424_v59, 0.0  ;;  %v408_v9 = vmul.f32 %v2210_v21, %v388_v5  ;;  %v409_v13 = vmul.f32 %v2210_v21, %v389_v10  ;;  %v463_v59 = vld [vmem:[%s3017_s5 + $0x18] sm:$0xff] }
  0x19   : > { %1869 = vmatprep.subr.bf16.mxu0 %v2093_v3  ;;  %v425_v63 = vadd.f32 %v2222_v26, %v405_v60  ;;  %v427_v8 = vadd.f32 %v2222_v26, %v407_v4  ;;  %v469_v4 = vld [vmem:[%s3017_s5 + $0x48] sm:$0xff] }
  0x1a   : > { %v428_v12 = vadd.f32 %v2222_v26, %v408_v9  ;;  %v429_v15 = vadd.f32 %v2222_v26, %v409_v13  ;;  %v475_v9 = vld [vmem:[%s3017_s5 + $0x78] sm:$0xff]  ;;  %v472_v13 = vld [vmem:[%s3017_s5 + $0x60] sm:$0xff] }
  0x1b   : > { %v438_v2 = vmax.f32 %v425_v63, 0.0  ;;  %v440_v11 = vmax.f32 %v427_v8, 0.0  ;;  %v464_v63 = vld [vmem:[%s3017_s5 + $0x20] sm:$0xff]  ;;  %v471_v8 = vld [vmem:[%s3017_s5 + $0x58] sm:$0xff] }
  0x1c   : > { %1871 = vmatpush3.bf16.msra.mxu0 %v1870_v19  ;;  %v441_v14 = vmax.f32 %v428_v12, 0.0  ;;  %v442_v16 = vmax.f32 %v429_v15, 0.0  ;;  %v468_v12 = vld [vmem:[%s3017_s5 + $0x40] sm:$0xff] }
  0x1d   : > { %1872 = vmatprep.subr.bf16.mxu0 %v2093_v3  ;;  %v1884_v15 = vpack.c.bf16 %v472_v13, %v468_v12 }
  0x20   : > { %1874 = vmatpush3.bf16.msra.mxu0 %v1873_v25 }
  0x21   : > { %1875 = vmatprep.subr.bf16.mxu0 %v2093_v3  ;;  %v426_v3 = vadd.f32 %v2222_v26, %v406_v0  ;;  %v1910_v0 = vpack.c.bf16 %v467_v61, %v463_v59  ;;  %v496_v61 = vld [vmem:[%s3017_s5 + $0x120] sm:$0xff] }
  0x23   : > { %v439_v7 = vmax.f32 %v426_v3, 0.0  ;;  %v466_v3 = vld [vmem:[%s3017_s5 + $0x30] sm:$0xff] }
  0x24   : > { %1877 = vmatpush3.bf16.msra.mxu0 %v1876_v32 }
  0x25   : > { %1911 = vmatprep.subr.bf16.mxu0 %v1910_v0  ;;  %v498_v0 = vld [vmem:[%s3017_s5 + $0x130] sm:$0xff] }
  0x27   : > { %1816 = vmatmul.mubr.f32.vlgmr.msra.gmra.mrb[0].mxu0 %v430_v34 }
  0x28   : > { %1818 = vmatprep.mubr.msk.f32.mxu0 %vm2094_vm0, %v2095_v6 }
  0x2b   : > { %1819 = vmatmul.mubr.f32.gmra.mrb[2].mxu0 %v431_v38 }
  0x2c   : > { %1821 = vmatprep.mubr.msk.f32.mxu0 %vm2094_vm0, %v2095_v6 }
  0x2f   : > { %1822 = vmatmul.mubr.f32.gmra.mrb[4].mxu0 %v432_v42 }
  0x30   : > { %1824 = vmatprep.mubr.msk.f32.mxu0 %vm2094_vm0, %v2095_v6 }
  0x33   : > { %1825 = vmatmul.mubr.f32.gmra.mrb[6].mxu0 %v433_v46 }
  0x34   : > { %1827 = vmatprep.mubr.msk.f32.mxu0 %vm2094_vm0, %v2095_v6 }
  0x37   : > { %1828 = vmatmul.mubr.f32.gmra.mrb[8].mxu0 %v434_v50 }
  0x38   : > { %1830 = vmatprep.mubr.msk.f32.mxu0 %vm2094_vm0, %v2095_v6 }
  0x3b   : > { %1831 = vmatmul.mubr.f32.gmra.mrb[10].mxu0 %v435_v54 }
  0x3c   : > { %1833 = vmatprep.mubr.msk.f32.mxu0 %vm2094_vm0, %v2095_v6 }
  0x3f   : > { %1834 = vmatmul.mubr.f32.gmra.mrb[12].mxu0 %v436_v58  ;;  %v465_v58 = vld [vmem:[%s3017_s5 + $0x28] sm:$0xff] }
  0x40   : > { %1836 = vmatprep.mubr.msk.f32.mxu0 %vm2094_vm0, %v2095_v6  ;;  %v1878_v60 = vpack.c.bf16 %v465_v58, %v461_v57 }
  0x42   : > { %1879 = vmatprep.subr.bf16.mxu1 %v1878_v60  ;;  %v492_v60 = vld [vmem:[%s3017_s5 + $0x100] sm:$0xff] }
  0x43   : > { %1837 = vmatmul.mubr.f32.gmra.mrb[14].mxu0 %v437_v62  ;;  %v460_v62 = vld [vmem:[%s3017_s5] sm:$0xff] }
  0x44   : > { %1839 = vmatprep.mubr.msk.f32.mxu0 %vm2094_vm0, %v2095_v6  ;;  %v1880_v1 = vpack.c.bf16 %v464_v63, %v460_v62  ;;  %v494_v63 = vld [vmem:[%s3017_s5 + $0x110] sm:$0xff] }
  0x46   : > { %1881 = vmatpush1.bf16.msra.mxu1 %v1880_v1  ;;  %v1896_v1 = vpack.c.bf16 %v496_v61, %v492_v60  ;;  %v514_v61 = vld [vmem:[%s3017_s5 + $0x1b0] sm:$0xff] }
  0x47   : > { %1840 = vmatmul.mubr.f32.gmra.mrb[16].mxu0 %v438_v2  ;;  %v462_v2 = vld [vmem:[%s3017_s5 + $0x10] sm:$0xff] }
  0x48   : > { %1842 = vmatprep.mubr.msk.f32.mxu0 %vm2094_vm0, %v2095_v6  ;;  %v1912_v5 = vpack.c.bf16 %v466_v3, %v462_v2  ;;  %v1928_v2 = vpack.c.bf16 %v498_v0, %v494_v63 }
  0x4a   : > { %1913 = vmatpush1.bf16.msra.mxu0 %v1912_v5 }
  0x4b   : > { %1843 = vmatmul.mubr.f32.gmra.mrb[18].mxu0 %v439_v7  ;;  %v473_v7 = vld [vmem:[%s3017_s5 + $0x68] sm:$0xff] }
  0x4c   : > { %1845 = vmatprep.mubr.msk.f32.mxu0 %vm2094_vm0, %v2095_v6  ;;  %v1882_v10 = vpack.c.bf16 %v473_v7, %v469_v4 }
  0x4e   : > { %1883 = vmatprep.subr.bf16.mxu1 %v1882_v10 }
  0x4f   : > { %1846 = vmatmul.mubr.f32.gmra.mrb[20].mxu0 %v440_v11  ;;  %v1914_v11 = vpack.c.bf16 %v475_v9, %v471_v8  ;;  %1885 = vmatpush1.bf16.msra.mxu1 %v1884_v15 }
  0x50   : > { %1848 = vmatprep.mubr.msk.f32.mxu0 %vm2094_vm0, %v2095_v6 }
  0x51   : > { %1915 = vmatprep.subr.bf16.mxu0 %v1914_v11 }
  0x53   : > { %1849 = vmatmul.mubr.f32.gmra.mrb[22].mxu0 %v441_v14  ;;  %v470_v14 = vld [vmem:[%s3017_s5 + $0x50] sm:$0xff] }
  0x54   : > { %1851 = vmatprep.mubr.msk.f32.mxu0 %vm2094_vm0, %v2095_v6 }
  0x57   : > { %1852 = vmatmul.mubr.f32.gmra.mrb[24].mxu0 %v442_v16  ;;  %v474_v16 = vld [vmem:[%s3017_s5 + $0x70] sm:$0xff] }
  0x58   : > { %1071 = vmatprep.mubr.f32.mxu0 %v2095_v6 }
  0xfa   : > { %v662_v18 = vpop.f32.mrb[0].mxu0 }
  0xfb   : > { %v2295_v19 = vadd.f32 %v1608_v17, %v662_v18  ;;  %v1817_v20 = vpop.f32.mrb[1].mxu0  ;;  %v481_v18 = vld [vmem:[%s3017_s5 + $0xa8] sm:$0xff] }
  0xfc   : > { %v1916_v20 = vpack.c.bf16 %v474_v16, %v470_v14 }
  0xfd   : > { %726 = vmax.xlane.f32.xlu0 %v2295_v19 }
  0xfe   : > { %v667_v21 = vpop.f32.mrb[2].mxu0  ;;  %1917 = vmatpush1.bf16.msra.mxu0 %v1916_v20 }
  0xff   : > { %v2298_v22 = vadd.f32 %v1608_v17, %v667_v21  ;;  %v1820_v23 = vpop.f32.mrb[3].mxu0 }
 0x100   : > { %v479_v23 = vld [vmem:[%s3017_s5 + $0x98] sm:$0xff] }
 0x101   : > { %728 = vmax.xlane.f32.xlu0 %v2298_v22 }
 0x102   : > { %v672_v24 = vpop.f32.mrb[4].mxu0 }
 0x103   : > { %v2301_v25 = vadd.f32 %v1608_v17, %v672_v24  ;;  %v1823_v26 = vpop.f32.mrb[5].mxu0  ;;  %v483_v24 = vld [vmem:[%s3017_s5 + $0xb8] sm:$0xff] }
 0x104   : > { %v476_v26 = vld [vmem:[%s3017_s5 + $0x80] sm:$0xff] }
 0x105   : > { %730 = vmax.xlane.f32.xlu1 %v2301_v25 }
 0x106   : > { %v677_v27 = vpop.f32.mrb[6].mxu0 }
 0x107   : > { %v2304_v28 = vadd.f32 %v1608_v17, %v677_v27  ;;  %v1826_v29 = vpop.f32.mrb[7].mxu0  ;;  %v1918_v27 = vpack.c.bf16 %v483_v24, %v479_v23 }
 0x108   : > { %v480_v29 = vld [vmem:[%s3017_s5 + $0xa0] sm:$0xff] }
 0x109   : > { %732 = vmax.xlane.f32.xlu1 %v2304_v28  ;;  %1919 = vmatprep.subr.bf16.mxu0 %v1918_v27 }
 0x10a   : > { %v682_v30 = vpop.f32.mrb[8].mxu0 }
 0x10b   : > { %v2307_v31 = vadd.f32 %v1608_v17, %v682_v30  ;;  %v1829_v32 = vpop.f32.mrb[9].mxu0  ;;  %v478_v30 = vld [vmem:[%s3017_s5 + $0x90] sm:$0xff] }
 0x10c   : > { %v482_v32 = vld [vmem:[%s3017_s5 + $0xb0] sm:$0xff] }
 0x10d   : > { %734 = vmax.xlane.f32.xlu0 %v2307_v31 }
 0x10e   : > { %v687_v33 = vpop.f32.mrb[10].mxu0 }
 0x10f   : > { %v2310_v34 = vadd.f32 %v1608_v17, %v687_v33  ;;  %v1832_v35 = vpop.f32.mrb[11].mxu0  ;;  %v1888_v33 = vpack.c.bf16 %v480_v29, %v476_v26  ;;  %v501_v29 = vld [vmem:[%s3017_s5 + $0x148] sm:$0xff] }
 0x110   : > { %v485_v35 = vld [vmem:[%s3017_s5 + $0xc8] sm:$0xff] }
 0x111   : > { %736 = vmax.xlane.f32.xlu1 %v2310_v34 }
 0x112   : > { %v692_v36 = vpop.f32.mrb[12].mxu0 }
 0x113   : > { %v2313_v37 = vadd.f32 %v1608_v17, %v692_v36  ;;  %v1835_v38 = vpop.f32.mrb[13].mxu0  ;;  %v489_v36 = vld [vmem:[%s3017_s5 + $0xe8] sm:$0xff] }
 0x114   : > { %v487_v38 = vld [vmem:[%s3017_s5 + $0xd8] sm:$0xff] }
 0x115   : > { %738 = vmax.xlane.f32.xlu0 %v2313_v37 }
 0x116   : > { %v697_v39 = vpop.f32.mrb[14].mxu0 }
 0x117   : > { %v2316_v40 = vadd.f32 %v1608_v17, %v697_v39  ;;  %v1838_v41 = vpop.f32.mrb[15].mxu0  ;;  %v1920_v39 = vpack.c.bf16 %v482_v32, %v478_v30  ;;  %v503_v30 = vld [vmem:[%s3017_s5 + $0x158] sm:$0xff] }
 0x118   : > { %v1890_v41 = vpack.c.bf16 %v489_v36, %v485_v35  ;;  %v500_v35 = vld [vmem:[%s3017_s5 + $0x140] sm:$0xff] }
 0x119   : > { %740 = vmax.xlane.f32.xlu1 %v2316_v40  ;;  %1921 = vmatpush1.bf16.msra.mxu0 %v1920_v39  ;;  %v504_v36 = vld [vmem:[%s3017_s5 + $0x160] sm:$0xff] }
 0x11a   : > { %v702_v42 = vpop.f32.mrb[16].mxu0  ;;  %v1900_v39 = vpack.c.bf16 %v504_v36, %v500_v35  ;;  %v573_v35 = vld [vmem:[%s3019_s7 + $0x180] sm:$0xff]  ;;  %v574_v36 = vld [vmem:[%s3019_s7 + $0x188] sm:$0xff] }
 0x11b   : > { %v2319_v43 = vadd.f32 %v1608_v17, %v702_v42  ;;  %v1841_v44 = vpop.f32.mrb[17].mxu0  ;;  %v491_v42 = vld [vmem:[%s3017_s5 + $0xf8] sm:$0xff] }
 0x11c   : > { %v484_v44 = vld [vmem:[%s3017_s5 + $0xc0] sm:$0xff] }
 0x11d   : > { %742 = vmax.xlane.f32.xlu0 %v2319_v43 }
 0x11e   : > { %v707_v45 = vpop.f32.mrb[18].mxu0 }
 0x11f   : > { %v2322_v46 = vadd.f32 %v1608_v17, %v707_v45  ;;  %v1844_v47 = vpop.f32.mrb[19].mxu0  ;;  %v488_v45 = vld [vmem:[%s3017_s5 + $0xe0] sm:$0xff] }
 0x120   : > { %v1922_v47 = vpack.c.bf16 %v491_v42, %v487_v38  ;;  %v1892_v57 = vpack.c.bf16 %v488_v45, %v484_v44 }
 0x121   : > { %744 = vmax.xlane.f32.xlu1 %v2322_v46 }
 0x122   : > { %v712_v48 = vpop.f32.mrb[20].mxu0  ;;  %1923 = vmatprep.subr.bf16.mxu0 %v1922_v47 }
 0x123   : > { %v2325_v49 = vadd.f32 %v1608_v17, %v712_v48  ;;  %v1847_v50 = vpop.f32.mrb[21].mxu0  ;;  %v486_v48 = vld [vmem:[%s3017_s5 + $0xd0] sm:$0xff] }
 0x124   : > { %v490_v50 = vld [vmem:[%s3017_s5 + $0xf0] sm:$0xff] }
 0x125   : > { %746 = vmax.xlane.f32.xlu0 %v2325_v49  ;;  %v1924_v58 = vpack.c.bf16 %v490_v50, %v486_v48  ;;  %v509_v48 = vld [vmem:[%s3017_s5 + $0x188] sm:$0xff] }
 0x126   : > { %v717_v51 = vpop.f32.mrb[22].mxu0  ;;  %v513_v50 = vld [vmem:[%s3017_s5 + $0x1a8] sm:$0xff] }
 0x127   : > { %v2328_v52 = vadd.f32 %v1608_v17, %v717_v51  ;;  %v1850_v53 = vpop.f32.mrb[23].mxu0  ;;  %v493_v51 = vld [vmem:[%s3017_s5 + $0x108] sm:$0xff]  ;;  %1925 = vmatpush1.bf16.msra.mxu0 %v1924_v58  ;;  %v512_v58 = vld [vmem:[%s3017_s5 + $0x1a0] sm:$0xff] }
 0x128   : > { %v497_v53 = vld [vmem:[%s3017_s5 + $0x128] sm:$0xff] }
 0x129   : > { %748 = vmax.xlane.f32.xlu1 %v2328_v52  ;;  %v1894_v59 = vpack.c.bf16 %v497_v53, %v493_v51  ;;  %v511_v51 = vld [vmem:[%s3017_s5 + $0x198] sm:$0xff] }
 0x12a   : > { %v722_v54 = vpop.f32.mrb[24].mxu0 }
 0x12b   : > { %v2331_v55 = vadd.f32 %v1608_v17, %v722_v54  ;;  %v1853_v56 = vpop.f32.mrb[25].mxu0  ;;  %v477_v17 = vld [vmem:[%s3017_s5 + $0x88] sm:$0xff]  ;;  %v495_v54 = vld [vmem:[%s3017_s5 + $0x118] sm:$0xff] }
 0x12c   : > { %v1886_v21 = vpack.c.bf16 %v481_v18, %v477_v17  ;;  %v499_v56 = vld [vmem:[%s3017_s5 + $0x138] sm:$0xff] }
 0x12d   : > { %750 = vmax.xlane.f32.xlu0 %v2331_v55  ;;  %v1926_v62 = vpack.c.bf16 %v499_v56, %v495_v54  ;;  %v1902_v54 = vpack.c.bf16 %v513_v50, %v509_v48  ;;  %v515_v56 = vld [vmem:[%s3017_s5 + $0x1b8] sm:$0xff]  ;;  %v557_v48 = vld [vmem:[%s3019_s7 + $0x100] sm:$0xff]  ;;  %v558_v50 = vld [vmem:[%s3019_s7 + $0x108] sm:$0xff] }
 0x12e   : > { %1887 = vmatprep.subr.bf16.mxu1 %v1886_v21 }
 0x12f   : > { %1889 = vmatpush1.bf16.msra.mxu1 %v1888_v33  ;;  %1927 = vmatprep.subr.bf16.mxu0 %v1926_v62  ;;  %v507_v33 = vld [vmem:[%s3017_s5 + $0x178] sm:$0xff] }
 0x130   : > { %1891 = vmatprep.subr.bf16.mxu1 %v1890_v41  ;;  %1929 = vmatpush1.bf16.msra.mxu0 %v1928_v2  ;;  %v1930_v38 = vpack.c.bf16 %v507_v33, %v503_v30  ;;  %v502_v41 = vld [vmem:[%s3017_s5 + $0x150] sm:$0xff]  ;;  %v517_v2 = vld [vmem:[%s3017_s5 + $0x1c8] sm:$0xff] }
 0x132   : > { %1931 = vmatprep.subr.bf16.mxu0 %v1930_v38  ;;  %v2590_v38 = vpack.c.bf16 %v574_v36, %v573_v35  ;;  %v563_v36 = vld [vmem:[%s3019_s7 + $0x130] sm:$0xff] }
 0x133   : > { %1893 = vmatpush1.bf16.msra.mxu1 %v1892_v57  ;;  %v508_v57 = vld [vmem:[%s3017_s5 + $0x180] sm:$0xff] }
 0x134   : > { %1895 = vmatprep.subr.bf16.mxu1 %v1894_v59  ;;  %v1934_v59 = vpack.c.bf16 %v515_v56, %v511_v51  ;;  %v1904_v60 = vpack.c.bf16 %v512_v58, %v508_v57  ;;  %v544_v51 = vld [vmem:[%s3019_s7 + $0x98] sm:$0xff] }
 0x137   : > { %1897 = vmatpush1.bf16.msra.mxu1 %v1896_v1 }
 0x18a   : > { %v727_v3 = vpop.xlane.xlu0 %726 }
 0x18b   : > { %v752_v4 = vsub.f32 %v2295_v19, %v727_v3  ;;  %v521_v3 = vld [vmem:[%s3017_s5 + $0x1e8] sm:$0xff] }
 0x18d   : > { %v765_v5 = vmul.f32 1.442695, %v752_v4  ;;  %v519_v4 = vld [vmem:[%s3017_s5 + $0x1d8] sm:$0xff] }
 0x18e   : > { %v729_v7 = vpop.xlane.xlu0 %728 }
 0x18f   : > { %2033 = vpow2.f32 %v765_v5  ;;  %v753_v8 = vsub.f32 %v2298_v22, %v729_v7  ;;  %v1906_v7 = vpack.c.bf16 %v521_v3, %v517_v2  ;;  %v560_v2 = vld [vmem:[%s3019_s7 + $0x118] sm:$0xff]  ;;  %v546_v3 = vld [vmem:[%s3019_s7 + $0xa8] sm:$0xff] }
 0x191   : > { %v767_v9 = vmul.f32 1.442695, %v753_v8  ;;  %v523_v8 = vld [vmem:[%s3017_s5 + $0x1f8] sm:$0xff] }
 0x192   : > { %v731_v10 = vpop.xlane.xlu1 %730 }
 0x193   : > { %2035 = vpow2.f32 %v767_v9  ;;  %v754_v11 = vsub.f32 %v2301_v25, %v731_v10  ;;  %v516_v9 = vld [vmem:[%s3017_s5 + $0x1c0] sm:$0xff] }
 0x194   : > { %v520_v10 = vld [vmem:[%s3017_s5 + $0x1e0] sm:$0xff] }
 0x195   : > { %v769_v12 = vmul.f32 1.442695, %v754_v11  ;;  %v1938_v11 = vpack.c.bf16 %v523_v8, %v519_v4  ;;  %v577_v4 = vld [vmem:[%s3019_s7 + $0x1a0] sm:$0xff] }
 0x196   : > { %v733_v13 = vpop.xlane.xlu1 %732 }
 0x197   : > { %2037 = vpow2.f32 %v769_v12  ;;  %v755_v14 = vsub.f32 %v2304_v28, %v733_v13  ;;  %v1908_v12 = vpack.c.bf16 %v520_v10, %v516_v9  ;;  %v522_v13 = vld [vmem:[%s3017_s5 + $0x1f0] sm:$0xff] }
 0x199   : > { %v2458_v15 = vpop.eup %2033  ;;  %v771_v16 = vmul.f32 1.442695, %v755_v14 }
 0x19a   : > { %v735_v17 = vpop.xlane.xlu0 %734  ;;  %791 = vadd.xlane.f32.xlu1 %v2458_v15 }
 0x19b   : > { %2039 = vpow2.f32 %v771_v16  ;;  %v756_v19 = vsub.f32 %v2307_v31, %v735_v17 }
 0x19d   : > { %v2462_v22 = vpop.eup %2035  ;;  %v773_v18 = vmul.f32 1.442695, %v756_v19 }
 0x19e   : > { %v737_v20 = vpop.xlane.xlu1 %736  ;;  %793 = vadd.xlane.f32.xlu0 %v2462_v22 }
 0x19f   : > { %2041 = vpow2.f32 %v773_v18  ;;  %v757_v25 = vsub.f32 %v2310_v34, %v737_v20  ;;  %v505_v34 = vld [vmem:[%s3017_s5 + $0x168] sm:$0xff] }
 0x1a0   : > { %v1898_v32 = vpack.c.bf16 %v505_v34, %v501_v29 }
 0x1a1   : > { %v2466_v21 = vpop.eup %2037  ;;  %v775_v28 = vmul.f32 1.442695, %v757_v25 }
 0x1a2   : > { %v739_v23 = vpop.xlane.xlu0 %738  ;;  %795 = vadd.xlane.f32.xlu1 %v2466_v21  ;;  %1899 = vmatprep.subr.bf16.mxu1 %v1898_v32  ;;  %v542_v32 = vld [vmem:[%s3019_s7 + $0x88] sm:$0xff] }
 0x1a3   : > { %2043 = vpow2.f32 %v775_v28  ;;  %v758_v24 = vsub.f32 %v2313_v37, %v739_v23  ;;  %1901 = vmatpush1.bf16.msra.mxu1 %v1900_v39 }
 0x1a4   : > { %1903 = vmatprep.subr.bf16.mxu1 %v1902_v54  ;;  %v576_v54 = vld [vmem:[%s3019_s7 + $0x198] sm:$0xff] }
 0x1a5   : > { %v2470_v26 = vpop.eup %2039  ;;  %v777_v31 = vmul.f32 1.442695, %v758_v24 }
 0x1a6   : > { %v741_v27 = vpop.xlane.xlu1 %740  ;;  %797 = vadd.xlane.f32.xlu0 %v2470_v26 }
 0x1a7   : > { %2045 = vpow2.f32 %v777_v31  ;;  %v759_v37 = vsub.f32 %v2316_v40, %v741_v27  ;;  %v506_v40 = vld [vmem:[%s3017_s5 + $0x170] sm:$0xff]  ;;  %1905 = vmatpush1.bf16.msra.mxu1 %v1904_v60 }
 0x1a8   : > { %v1932_v45 = vpack.c.bf16 %v506_v40, %v502_v41  ;;  %1907 = vmatprep.subr.bf16.mxu1 %v1906_v7  ;;  %v527_v60 = vld [vmem:[%s3019_s7 + $0x10] sm:$0xff] }
 0x1a9   : > { %v2498_v42 = vpop.eup %2041  ;;  %v779_v44 = vmul.f32 1.442695, %v759_v37 }
 0x1aa   : > { %v743_v47 = vpop.xlane.xlu0 %742  ;;  %799 = vadd.xlane.f32.xlu1 %v2498_v42  ;;  %1933 = vmatpush1.bf16.msra.mxu0 %v1932_v45  ;;  %v526_v45 = vld [vmem:[%s3019_s7 + $0x8] sm:$0xff] }
 0x1ab   : > { %2047 = vpow2.f32 %v779_v44  ;;  %v760_v53 = vsub.f32 %v2319_v43, %v743_v47  ;;  %v510_v43 = vld [vmem:[%s3017_s5 + $0x190] sm:$0xff]  ;;  %1935 = vmatprep.subr.bf16.mxu0 %v1934_v59  ;;  %1909 = vmatpush1.bf16.msra.mxu1 %v1908_v12  ;;  %v525_v44 = vld [vmem:[%s3019_s7] sm:$0xff]  ;;  %v530_v12 = vld [vmem:[%s3019_s7 + $0x28] sm:$0xff] }
 0x1ac   : > { %v1936_v0 = vpack.c.bf16 %v514_v61, %v510_v43  ;;  %v543_v47 = vld [vmem:[%s3019_s7 + $0x90] sm:$0xff]  ;;  %v1944_v59 = vpack.c.bf16 %v526_v45, %v525_v44  ;;  %v528_v43 = vld [vmem:[%s3019_s7 + $0x18] sm:$0xff]  ;;  %v2630_v61 = vpack.c.bf16 %v558_v50, %v557_v48  ;;  %v582_v44 = vld [vmem:[%s3019_s7 + $0x1c8] sm:$0xff] }
 0x1ad   : > { %v2526_v62 = vpop.eup %2043  ;;  %v781_v63 = vmul.f32 1.442695, %v760_v53  ;;  %v575_v53 = vld [vmem:[%s3019_s7 + $0x190] sm:$0xff]  ;;  %v1948_v10 = vpack.c.bf16 %v528_v43, %v527_v60  ;;  %v552_v60 = vld [vmem:[%s3019_s7 + $0xd8] sm:$0xff] }
 0x1ae   : > { %v745_v1 = vpop.xlane.xlu1 %744  ;;  %801 = vadd.xlane.f32.xlu0 %v2526_v62  ;;  %1937 = vmatpush1.bf16.msra.mxu0 %v1936_v0  ;;  %v545_v0 = vld [vmem:[%s3019_s7 + $0xa0] sm:$0xff]  ;;  %v583_v43 = vld [vmem:[%s3019_s7 + $0x1d0] sm:$0xff] }
 0x1af   : > { %2049 = vpow2.f32 %v781_v63  ;;  %v761_v5 = vsub.f32 %v2322_v46, %v745_v1  ;;  %v518_v46 = vld [vmem:[%s3017_s5 + $0x1d0] sm:$0xff]  ;;  %1939 = vmatprep.subr.bf16.mxu0 %v1938_v11  ;;  %v1946_v63 = vpack.c.bf16 %v544_v51, %v543_v47  ;;  %v2635_v1 = vpack.c.bf16 %v576_v54, %v575_v53  ;;  %v529_v11 = vld [vmem:[%s3019_s7 + $0x20] sm:$0xff]  ;;  %v534_v53 = vld [vmem:[%s3019_s7 + $0x48] sm:$0xff] }
 0x1b0   : > { %v1940_v17 = vpack.c.bf16 %v522_v13, %v518_v46  ;;  %v1950_v13 = vpack.c.bf16 %v546_v3, %v545_v0  ;;  %v533_v51 = vld [vmem:[%s3019_s7 + $0x40] sm:$0xff] }
 0x1b1   : > { %v2554_v14 = vpop.eup %2045  ;;  %v783_v16 = vmul.f32 1.442695, %v761_v5  ;;  %v578_v5 = vld [vmem:[%s3019_s7 + $0x1a8] sm:$0xff]  ;;  %v1960_v3 = vpack.c.bf16 %v534_v53, %v533_v51  ;;  %v569_v51 = vld [vmem:[%s3019_s7 + $0x160] sm:$0xff] }
 0x1b2   : > { %v747_v19 = vpop.xlane.xlu0 %746  ;;  %803 = vadd.xlane.f32.xlu1 %v2554_v14  ;;  %1941 = vmatpush1.bf16.msra.mxu0 %v1940_v17  ;;  %v561_v17 = vld [vmem:[%s3019_s7 + $0x120] sm:$0xff] }
 0x1b3   : > { %2051 = vpow2.f32 %v783_v16  ;;  %v762_v18 = vsub.f32 %v2325_v49, %v747_v19  ;;  %1975 = vmatprep.subr.bf16.mxu0 %v2590_v38  ;;  %v2669_v16 = vpack.c.bf16 %v578_v5, %v577_v4  ;;  %v562_v19 = vld [vmem:[%s3019_s7 + $0x128] sm:$0xff]  ;;  %v535_v4 = vld [vmem:[%s3019_s7 + $0x50] sm:$0xff]  ;;  %v536_v5 = vld [vmem:[%s3019_s7 + $0x58] sm:$0xff] }
 0x1b5   : > { %v2558_v20 = vpop.eup %2047  ;;  %v785_v25 = vmul.f32 1.442695, %v762_v18  ;;  %v548_v18 = vld [vmem:[%s3019_s7 + $0xb8] sm:$0xff] }
 0x1b6   : > { %v749_v28 = vpop.xlane.xlu1 %748  ;;  %805 = vadd.xlane.f32.xlu0 %v2558_v20 }
 0x1b7   : > { %2053 = vpow2.f32 %v785_v25  ;;  %v763_v23 = vsub.f32 %v2328_v52, %v749_v28  ;;  %v579_v25 = vld [vmem:[%s3019_s7 + $0x1b0] sm:$0xff]  ;;  %v580_v28 = vld [vmem:[%s3019_s7 + $0x1b8] sm:$0xff] }
 0x1b8   : > { %v2703_v35 = vpack.c.bf16 %v580_v28, %v579_v25  ;;  %v1964_v25 = vpack.c.bf16 %v536_v5, %v535_v4 }
 0x1b9   : > { %v2562_v24 = vpop.eup %2049  ;;  %v787_v31 = vmul.f32 1.442695, %v763_v23 }
 0x1ba   : > { %807 = vadd.xlane.f32.xlu1 %v2562_v24  ;;  %v751_v27 = vpop.xlane.xlu0 %750 }
 0x1bb   : > { %2055 = vpow2.f32 %v787_v31  ;;  %v764_v49 = vsub.f32 %v2331_v55, %v751_v27  ;;  %v541_v55 = vld [vmem:[%s3019_s7 + $0x80] sm:$0xff] }
 0x1bc   : > { %v1942_v33 = vpack.c.bf16 %v542_v32, %v541_v55  ;;  %v532_v55 = vld [vmem:[%s3019_s7 + $0x38] sm:$0xff]  ;;  %v2697_v32 = vpack.c.bf16 %v562_v19, %v561_v17 }
 0x1bd   : > { %v2566_v29 = vpop.eup %2051  ;;  %v789_v34 = vmul.f32 1.442695, %v764_v49  ;;  %v1952_v49 = vpack.c.bf16 %v530_v12, %v529_v11  ;;  %v568_v11 = vld [vmem:[%s3019_s7 + $0x158] sm:$0xff]  ;;  %v554_v12 = vld [vmem:[%s3019_s7 + $0xe8] sm:$0xff] }
 0x1be   : > { %809 = vadd.xlane.f32.xlu0 %v2566_v29  ;;  %1943 = vmatprep.subr.bf16.mxu1 %v1942_v33 }
 0x1bf   : > { %2057 = vpow2.f32 %v789_v34  ;;  %v531_v34 = vld [vmem:[%s3019_s7 + $0x30] sm:$0xff] }
 0x1c0   : > { %v1956_v50 = vpack.c.bf16 %v532_v55, %v531_v34 }
 0x1c1   : > { %v2569_v30 = vpop.eup %2053 }
 0x1c2   : > { %811 = vadd.xlane.f32.xlu1 %v2569_v30 }
 0x1c5   : > { %v2572_v52 = vpop.eup %2055 }
 0x1c6   : > { %813 = vadd.xlane.f32.xlu0 %v2572_v52 }
 0x1c9   : > { %v2575_v37 = vpop.eup %2057 }
 0x1ca   : > { %815 = vadd.xlane.f32.xlu1 %v2575_v37 }
 0x227   : > { %v792_v39 = vpop.xlane.xlu1 %791 }
 0x228   : > { %2059 = vrcp.f32 %v792_v39  ;;  %v564_v39 = vld [vmem:[%s3019_s7 + $0x138] sm:$0xff] }
 0x229   : > { %v2731_v54 = vpack.c.bf16 %v564_v39, %v563_v36 }
 0x22b   : > { %v794_v41 = vpop.xlane.xlu0 %793 }
 0x22c   : > { %2061 = vrcp.f32 %v794_v41  ;;  %v550_v41 = vld [vmem:[%s3019_s7 + $0xc8] sm:$0xff] }
 0x22f   : > { %v796_v40 = vpop.xlane.xlu1 %795 }
 0x230   : > { %2063 = vrcp.f32 %v796_v40  ;;  %v581_v40 = vld [vmem:[%s3019_s7 + $0x1c0] sm:$0xff] }
 0x232   : > { %v2060_v56 = vpop.eup %2059 }
 0x233   : > { %v798_v57 = vpop.xlane.xlu0 %797  ;;  %v818_v58 = vmul.f32 %v2060_v56, %v2458_v15  ;;  %v559_v15 = vld [vmem:[%s3019_s7 + $0x110] sm:$0xff] }
 0x234   : > { %2065 = vrcp.f32 %v798_v57  ;;  %v2663_v46 = vpack.c.bf16 %v560_v2, %v559_v15  ;;  %v2737_v57 = vpack.c.bf16 %v582_v44, %v581_v40 }
 0x235   : > { %929 = vmatmul.mubr.f32.vlgmr.msra.gmra.mrb[0].mxu1 %v818_v58  ;;  %1495 = vst [vmem:[%s2621_s11] sm:$0xff] %v818_v58  ;;  %1072 = vmatmul.mubr.f32.vlgmr.msra.gmra.mrb[26].mxu0 %v818_v58  ;;  %v565_v58 = vld [vmem:[%s3019_s7 + $0x140] sm:$0xff] }
 0x236   : > { %v2062_v7 = vpop.eup %2061  ;;  %934 = vmatprep.mubr.f32.mxu1 %v2095_v6  ;;  %1077 = vmatprep.mubr.f32.mxu0 %v2095_v6 }
 0x237   : > { %v800_v8 = vpop.xlane.xlu1 %799  ;;  %v820_v9 = vmul.f32 %v2062_v7, %v2462_v22  ;;  %1945 = vmatpush3.bf16.msra.mxu1 %v1944_v59  ;;  %1977 = vmatpush3.bf16.msra.mxu0 %v2630_v61  ;;  %v547_v22 = vld [vmem:[%s3019_s7 + $0xb0] sm:$0xff]  ;;  %v566_v59 = vld [vmem:[%s3019_s7 + $0x148] sm:$0xff] }
 0x238   : > { %2067 = vrcp.f32 %v800_v8  ;;  %1947 = vmatprep.subr.bf16.mxu1 %v1946_v63  ;;  %1979 = vmatprep.subr.bf16.mxu0 %v2635_v1  ;;  %v1954_v33 = vpack.c.bf16 %v548_v18, %v547_v22  ;;  %v584_v63 = vld [vmem:[%s3019_s7 + $0x1d8] sm:$0xff]  ;;  %v2765_v7 = vpack.c.bf16 %v566_v59, %v565_v58  ;;  %v586_v22 = vld [vmem:[%s3019_s7 + $0x1e8] sm:$0xff]  ;;  %v539_v58 = vld [vmem:[%s3019_s7 + $0x70] sm:$0xff] }
 0x239   : > { %935 = vmatmul.mubr.f32.gmra.mrb[2].mxu1 %v820_v9  ;;  %1496 = vst [vmem:[%s2621_s11 + $0x8] sm:$0xff] %v820_v9  ;;  %1078 = vmatmul.mubr.f32.gmra.mrb[28].mxu0 %v820_v9  ;;  %v2771_v9 = vpack.c.bf16 %v584_v63, %v583_v43  ;;  %v540_v59 = vld [vmem:[%s3019_s7 + $0x78] sm:$0xff] }
 0x23a   : > { %v2064_v23 = vpop.eup %2063  ;;  %940 = vmatprep.mubr.f32.mxu1 %v2095_v6  ;;  %1083 = vmatprep.mubr.f32.mxu0 %v2095_v6  ;;  %v1972_v43 = vpack.c.bf16 %v540_v59, %v539_v58 }
 0x23b   : > { %v802_v31 = vpop.xlane.xlu0 %801  ;;  %v822_v27 = vmul.f32 %v2064_v23, %v2466_v21  ;;  %1949 = vmatpush3.bf16.msra.mxu1 %v1948_v10  ;;  %1981 = vmatpush3.bf16.msra.mxu0 %v2663_v46  ;;  %v549_v21 = vld [vmem:[%s3019_s7 + $0xc0] sm:$0xff]  ;;  %v567_v10 = vld [vmem:[%s3019_s7 + $0x150] sm:$0xff] }
 0x23c   : > { %2069 = vrcp.f32 %v802_v31  ;;  %1951 = vmatprep.subr.bf16.mxu1 %v1950_v13  ;;  %1983 = vmatprep.subr.bf16.mxu0 %v2669_v16  ;;  %v1958_v56 = vpack.c.bf16 %v550_v41, %v549_v21  ;;  %v585_v13 = vld [vmem:[%s3019_s7 + $0x1e0] sm:$0xff]  ;;  %v2793_v28 = vpack.c.bf16 %v568_v11, %v567_v10 }
 0x23d   : > { %941 = vmatmul.mubr.f32.gmra.mrb[4].mxu1 %v822_v27  ;;  %1497 = vst [vmem:[%s2621_s11 + $0x10] sm:$0xff] %v822_v27  ;;  %1084 = vmatmul.mubr.f32.gmra.mrb[30].mxu0 %v822_v27  ;;  %v537_v31 = vld [vmem:[%s3019_s7 + $0x60] sm:$0xff]  ;;  %v538_v27 = vld [vmem:[%s3019_s7 + $0x68] sm:$0xff] }
 0x23e   : > { %v2066_v45 = vpop.eup %2065  ;;  %946 = vmatprep.mubr.f32.mxu1 %v2095_v6  ;;  %1089 = vmatprep.mubr.f32.mxu0 %v2095_v6 }
 0x23f   : > { %v804_v47 = vpop.xlane.xlu1 %803  ;;  %v824_v48 = vmul.f32 %v2066_v45, %v2470_v26  ;;  %1953 = vmatpush3.bf16.msra.mxu1 %v1952_v49  ;;  %1985 = vmatpush3.bf16.msra.mxu0 %v2697_v32  ;;  %v551_v26 = vld [vmem:[%s3019_s7 + $0xd0] sm:$0xff] }
 0x240   : > { %2071 = vrcp.f32 %v804_v47  ;;  %1955 = vmatprep.subr.bf16.mxu1 %v1954_v33  ;;  %1987 = vmatprep.subr.bf16.mxu0 %v2703_v35  ;;  %v1962_v8 = vpack.c.bf16 %v552_v60, %v551_v26  ;;  %v1968_v33 = vpack.c.bf16 %v538_v27, %v537_v31  ;;  %v588_v60 = vld [vmem:[%s3019_s7 + $0x1f8] sm:$0xff] }
 0x241   : > { %947 = vmatmul.mubr.f32.gmra.mrb[6].mxu1 %v824_v48  ;;  %1498 = vst [vmem:[%s2621_s11 + $0x18] sm:$0xff] %v824_v48  ;;  %1090 = vmatmul.mubr.f32.gmra.mrb[32].mxu0 %v824_v48 }
 0x242   : > { %v2068_v0 = vpop.eup %2067  ;;  %952 = vmatprep.mubr.f32.mxu1 %v2095_v6  ;;  %1095 = vmatprep.mubr.f32.mxu0 %v2095_v6 }
 0x243   : > { %v806_v15 = vpop.xlane.xlu0 %805  ;;  %v826_v2 = vmul.f32 %v2068_v0, %v2498_v42  ;;  %1957 = vmatpush3.bf16.msra.mxu1 %v1956_v50  ;;  %1989 = vmatpush3.bf16.msra.mxu0 %v2731_v54  ;;  %v553_v42 = vld [vmem:[%s3019_s7 + $0xe0] sm:$0xff]  ;;  %v571_v0 = vld [vmem:[%s3019_s7 + $0x170] sm:$0xff] }
 0x244   : > { %2073 = vrcp.f32 %v806_v15  ;;  %1959 = vmatprep.subr.bf16.mxu1 %v1958_v56  ;;  %1991 = vmatprep.subr.bf16.mxu0 %v2737_v57  ;;  %v1966_v23 = vpack.c.bf16 %v554_v12, %v553_v42  ;;  %v555_v56 = vld [vmem:[%s3019_s7 + $0xf0] sm:$0xff]  ;;  %v572_v15 = vld [vmem:[%s3019_s7 + $0x178] sm:$0xff]  ;;  %v524_v42 = vld [vmem:[%s3018_s6] sm:$0xf] }
 0x245   : > { %953 = vmatmul.mubr.f32.gmra.mrb[8].mxu1 %v826_v2  ;;  %1499 = vst [vmem:[%s2621_s11 + $0x20] sm:$0xff] %v826_v2  ;;  %1096 = vmatmul.mubr.f32.gmra.mrb[34].mxu0 %v826_v2  ;;  %v2870_v2 = vpack.c.bf16 %v572_v15, %v571_v0 }
 0x246   : > { %v2070_v17 = vpop.eup %2069  ;;  %958 = vmatprep.mubr.f32.mxu1 %v2095_v6  ;;  %1101 = vmatprep.mubr.f32.mxu0 %v2095_v6 }
 0x247   : > { %v808_v19 = vpop.xlane.xlu1 %807  ;;  %v828_v18 = vmul.f32 %v2070_v17, %v2526_v62  ;;  %1961 = vmatpush3.bf16.msra.mxu1 %v1960_v3  ;;  %1993 = vmatpush3.bf16.msra.mxu0 %v2765_v7  ;;  %v2802_v62 = vpack.c.bf16 %v586_v22, %v585_v13  ;;  %v844_v3 = vlaneseq }
 0x248   : > { %2075 = vrcp.f32 %v808_v19  ;;  %1963 = vmatprep.subr.bf16.mxu1 %v1962_v8  ;;  %1995 = vmatprep.subr.bf16.mxu0 %v2771_v9 }
 0x249   : > { %959 = vmatmul.mubr.f32.gmra.mrb[10].mxu1 %v828_v18  ;;  %1500 = vst [vmem:[%s2621_s11 + $0x28] sm:$0xff] %v828_v18  ;;  %1102 = vmatmul.mubr.f32.gmra.mrb[36].mxu0 %v828_v18  ;;  %v845_v4 = vshrl.u32 %v844_v3, 7 }
 0x24a   : > { %v2072_v49 = vpop.eup %2071  ;;  %964 = vmatprep.mubr.f32.mxu1 %v2095_v6  ;;  %1107 = vmatprep.mubr.f32.mxu0 %v2095_v6 }
 0x24b   : > { %v810_v34 = vpop.xlane.xlu0 %809  ;;  %v830_v55 = vmul.f32 %v2072_v49, %v2554_v14  ;;  %1965 = vmatpush3.bf16.msra.mxu1 %v1964_v25  ;;  %1997 = vmatpush3.bf16.msra.mxu0 %v2793_v28  ;;  %v846_v5 = vsub.s32 0, %v845_v4  ;;  %v854_v8 = vsub.s32 2, %v845_v4  ;;  %v850_v10 = vsub.s32 1, %v845_v4 }
 0x24c   : > { %2077 = vrcp.f32 %v810_v34  ;;  %1967 = vmatprep.subr.bf16.mxu1 %v1966_v23  ;;  %1999 = vmatprep.subr.bf16.mxu0 %v2802_v62  ;;  %v858_v11 = vsub.s32 3, %v845_v4 }
 0x24d   : > { %965 = vmatmul.mubr.f32.gmra.mrb[12].mxu1 %v830_v55  ;;  %1501 = vst [vmem:[%s2621_s11 + $0x30] sm:$0xff] %v830_v55  ;;  %1108 = vmatmul.mubr.f32.gmra.mrb[38].mxu0 %v830_v55  ;;  %v2878_v12 = vrot.slane %v524_v42, %v846_v5  ;;  %v2880_v13 = vrot.slane %v524_v42, %v854_v8 }
 0x24e   : > { %v2074_v21 = vpop.eup %2073  ;;  %970 = vmatprep.mubr.f32.mxu1 %v2095_v6  ;;  %1113 = vmatprep.mubr.f32.mxu0 %v2095_v6  ;;  %v2882_v22 = vrot.slane %v524_v42, %v850_v10  ;;  %v2884_v17 = vrot.slane %v524_v42, %v858_v11 }
 0x24f   : > { %v812_v36 = vpop.xlane.xlu1 %811  ;;  %v832_v14 = vmul.f32 %v2074_v21, %v2558_v20  ;;  %1969 = vmatpush3.bf16.msra.mxu1 %v1968_v33 }
 0x250   : > { %2079 = vrcp.f32 %v812_v36 }
 0x251   : > { %971 = vmatmul.mubr.f32.gmra.mrb[14].mxu1 %v832_v14  ;;  %1502 = vst [vmem:[%s2621_s11 + $0x38] sm:$0xff] %v832_v14  ;;  %1114 = vmatmul.mubr.f32.gmra.mrb[40].mxu0 %v832_v14 }
 0x252   : > { %v2076_v39 = vpop.eup %2075  ;;  %976 = vmatprep.mubr.f32.mxu1 %v2095_v6  ;;  %1119 = vmatprep.mubr.f32.mxu0 %v2095_v6 }
 0x253   : > { %v814_v41 = vpop.xlane.xlu0 %813  ;;  %v834_v40 = vmul.f32 %v2076_v39, %v2562_v24 }
 0x254   : > { %2081 = vrcp.f32 %v814_v41 }
 0x255   : > { %977 = vmatmul.mubr.f32.gmra.mrb[16].mxu1 %v834_v40  ;;  %1503 = vst [vmem:[%s2621_s11 + $0x40] sm:$0xff] %v834_v40  ;;  %1120 = vmatmul.mubr.f32.gmra.mrb[42].mxu0 %v834_v40 }
 0x256   : > { %v2078_v20 = vpop.eup %2077  ;;  %982 = vmatprep.mubr.f32.mxu1 %v2095_v6  ;;  %1125 = vmatprep.mubr.f32.mxu0 %v2095_v6 }
 0x257   : > { %v816_v44 = vpop.xlane.xlu1 %815  ;;  %v836_v45 = vmul.f32 %v2078_v20, %v2566_v29 }
 0x258   : > { %2083 = vrcp.f32 %v816_v44 }
 0x259   : > { %983 = vmatmul.mubr.f32.gmra.mrb[18].mxu1 %v836_v45  ;;  %1504 = vst [vmem:[%s2621_s11 + $0x48] sm:$0xff] %v836_v45  ;;  %1126 = vmatmul.mubr.f32.gmra.mrb[44].mxu0 %v836_v45 }
 0x25a   : > { %v2080_v47 = vpop.eup %2079  ;;  %988 = vmatprep.mubr.f32.mxu1 %v2095_v6  ;;  %1131 = vmatprep.mubr.f32.mxu0 %v2095_v6 }
 0x25b   : > { %v838_v24 = vmul.f32 %v2080_v47, %v2569_v30 }
 0x25d   : > { %989 = vmatmul.mubr.f32.gmra.mrb[20].mxu1 %v838_v24  ;;  %1505 = vst [vmem:[%s2621_s11 + $0x50] sm:$0xff] %v838_v24  ;;  %1132 = vmatmul.mubr.f32.gmra.mrb[46].mxu0 %v838_v24 }
 0x25e   : > { %v2082_v48 = vpop.eup %2081  ;;  %994 = vmatprep.mubr.f32.mxu1 %v2095_v6  ;;  %1137 = vmatprep.mubr.f32.mxu0 %v2095_v6 }
 0x25f   : > { %v840_v29 = vmul.f32 %v2082_v48, %v2572_v52  ;;  %v570_v52 = vld [vmem:[%s3019_s7 + $0x168] sm:$0xff] }
 0x260   : > { %v2841_v53 = vpack.c.bf16 %v570_v52, %v569_v51 }
 0x261   : > { %995 = vmatmul.mubr.f32.gmra.mrb[22].mxu1 %v840_v29  ;;  %1506 = vst [vmem:[%s2621_s11 + $0x58] sm:$0xff] %v840_v29  ;;  %1138 = vmatmul.mubr.f32.gmra.mrb[48].mxu0 %v840_v29 }
 0x262   : > { %v2084_v50 = vpop.eup %2083  ;;  %1000 = vmatprep.mubr.f32.mxu1 %v2095_v6  ;;  %1143 = vmatprep.mubr.f32.mxu0 %v2095_v6  ;;  %v556_v6 = vld [vmem:[%s3019_s7 + $0xf8] sm:$0xff] }
 0x263   : > { %v842_v30 = vmul.f32 %v2084_v50, %v2575_v37  ;;  %2001 = vmatpush3.bf16.msra.mxu0 %v2841_v53  ;;  %v587_v37 = vld [vmem:[%s3019_s7 + $0x1f0] sm:$0xff]  ;;  %v1970_v26 = vpack.c.bf16 %v556_v6, %v555_v56 }
 0x264   : > { %v2862_v63 = vpack.c.bf16 %v588_v60, %v587_v37 }
 0x265   : > { %1001 = vmatmul.mubr.f32.gmra.mrb[24].mxu1 %v842_v30  ;;  %1507 = vst [vmem:[%s2621_s11 + $0x60] sm:$0xff] %v842_v30  ;;  %1144 = vmatmul.mubr.f32.gmra.mrb[50].mxu0 %v842_v30  ;;  %s2969_s11 = scalar_lea.vmem %s3021_s9, %s2192_s17 }
 0x266   : > { %1971 = vmatprep.subr.bf16.mxu1 %v1970_v26  ;;  %2003 = vmatprep.subr.bf16.mxu0 %v2862_v63 }
 0x267   : > { %1973 = vmatpush3.bf16.msra.mxu1 %v1972_v43  ;;  %2005 = vmatpush3.bf16.msra.mxu0 %v2870_v2 }
 0x268   : > { %2006 = vmatprep.subr.bf16.mxu1 %v2590_v38 }
 0x308   : > { %v930_v19 = vpop.f32.mrb[0].mxu1  ;;  %v1073_v38 = vpop.f32.mrb[26].mxu0 }
 0x309   : > { %v931_v18 = vadd.f32 %v930_v19, %v2878_v12  ;;  %v1074_v25 = vadd.f32 %v1073_v38, %v2880_v13  ;;  %v932_v23 = vpop.f32.mrb[1].mxu1  ;;  %v1075_v31 = vpop.f32.mrb[27].mxu0 }
 0x30a   : > { %v933_v27 = vadd.f32 %v932_v23, %v2882_v22  ;;  %v1076_v49 = vadd.f32 %v1075_v31, %v2884_v17 }
 0x30b   : > { %v1150_v36 = vmax.f32 %v931_v18, 0.0  ;;  %v1152_v14 = vmax.f32 %v1074_v25, 0.0 }
 0x30c   : > { %v1151_v34 = vmax.f32 %v933_v27, 0.0  ;;  %v1153_v55 = vmax.f32 %v1076_v49, 0.0  ;;  %v936_v33 = vpop.f32.mrb[2].mxu1  ;;  %v1079_v21 = vpop.f32.mrb[28].mxu0 }
 0x30d   : > { %v937_v39 = vadd.f32 %v936_v33, %v2878_v12  ;;  %v1080_v41 = vadd.f32 %v1079_v21, %v2880_v13  ;;  %v938_v40 = vpop.f32.mrb[3].mxu1  ;;  %v1081_v20 = vpop.f32.mrb[29].mxu0 }
 0x30e   : > { %v939_v44 = vadd.f32 %v938_v40, %v2882_v22  ;;  %v1082_v45 = vadd.f32 %v1081_v20, %v2884_v17  ;;  %1272 = vmatprep.mubr.f32.mxu1 %v1151_v34  ;;  %1402 = vmatprep.mubr.f32.mxu0 %v1153_v55 }
 0x30f   : > { %1273 = vmatmul.mubr.f32.vlgmr.msra.gmra.mrb[26].mxu1 %v1150_v36  ;;  %1403 = vmatmul.mubr.f32.vlgmr.msra.gmra.mrb[52].mxu0 %v1152_v14  ;;  %v1154_v50 = vmax.f32 %v937_v39, 0.0  ;;  %v1156_v30 = vmax.f32 %v1080_v41, 0.0 }
 0x310   : > { %v1155_v47 = vmax.f32 %v939_v44, 0.0  ;;  %v1157_v24 = vmax.f32 %v1082_v45, 0.0  ;;  %2014 = vmatpush3.bf16.msra.mxu1 %v2630_v61  ;;  %v942_v48 = vpop.f32.mrb[4].mxu1  ;;  %v1085_v29 = vpop.f32.mrb[30].mxu0 }
 0x311   : > { %v943_v51 = vadd.f32 %v942_v48, %v2878_v12  ;;  %v1086_v52 = vadd.f32 %v1085_v29, %v2880_v13  ;;  %v944_v56 = vpop.f32.mrb[5].mxu1  ;;  %v1087_v6 = vpop.f32.mrb[31].mxu0  ;;  %2007 = vmatprep.subr.bf16.mxu1 %v2635_v1 }
 0x312   : > { %v945_v37 = vadd.f32 %v944_v56, %v2882_v22  ;;  %v1088_v26 = vadd.f32 %v1087_v6, %v2884_v17  ;;  %1277 = vmatprep.mubr.f32.mxu1 %v1155_v47  ;;  %1407 = vmatprep.mubr.f32.mxu0 %v1157_v24 }
 0x313   : > { %1278 = vmatmul.mubr.f32.gmra.mrb[28].mxu1 %v1154_v50  ;;  %1408 = vmatmul.mubr.f32.gmra.mrb[54].mxu0 %v1156_v30  ;;  %v1158_v43 = vmax.f32 %v943_v51, 0.0  ;;  %v1160_v0 = vmax.f32 %v1086_v52, 0.0 }
 0x314   : > { %v1159_v61 = vmax.f32 %v945_v37, 0.0  ;;  %v1161_v58 = vmax.f32 %v1088_v26, 0.0  ;;  %v948_v59 = vpop.f32.mrb[6].mxu1  ;;  %v1091_v60 = vpop.f32.mrb[32].mxu0  ;;  %2015 = vmatpush3.bf16.msra.mxu1 %v2663_v46 }
 0x315   : > { %v949_v15 = vadd.f32 %v948_v59, %v2878_v12  ;;  %v1092_v1 = vadd.f32 %v1091_v60, %v2880_v13  ;;  %v950_v3 = vpop.f32.mrb[7].mxu1  ;;  %v1093_v4 = vpop.f32.mrb[33].mxu0  ;;  %2008 = vmatprep.subr.bf16.mxu1 %v2669_v16 }
 0x316   : > { %v951_v5 = vadd.f32 %v950_v3, %v2882_v22  ;;  %v1094_v8 = vadd.f32 %v1093_v4, %v2884_v17  ;;  %1282 = vmatprep.mubr.f32.mxu1 %v1159_v61  ;;  %1412 = vmatprep.mubr.f32.mxu0 %v1161_v58 }
 0x317   : > { %1283 = vmatmul.mubr.f32.gmra.mrb[30].mxu1 %v1158_v43  ;;  %1413 = vmatmul.mubr.f32.gmra.mrb[56].mxu0 %v1160_v0  ;;  %v1162_v19 = vmax.f32 %v949_v15, 0.0  ;;  %v1164_v38 = vmax.f32 %v1092_v1, 0.0 }
 0x318   : > { %v1163_v42 = vmax.f32 %v951_v5, 0.0  ;;  %v1165_v46 = vmax.f32 %v1094_v8, 0.0  ;;  %v954_v10 = vpop.f32.mrb[8].mxu1  ;;  %v1097_v11 = vpop.f32.mrb[34].mxu0  ;;  %2016 = vmatpush3.bf16.msra.mxu1 %v2697_v32 }
 0x319   : > { %v955_v18 = vadd.f32 %v954_v10, %v2878_v12  ;;  %v1098_v16 = vadd.f32 %v1097_v11, %v2880_v13  ;;  %v956_v25 = vpop.f32.mrb[9].mxu1  ;;  %v1099_v23 = vpop.f32.mrb[35].mxu0  ;;  %2009 = vmatprep.subr.bf16.mxu1 %v2703_v35 }
 0x31a   : > { %v957_v31 = vadd.f32 %v956_v25, %v2882_v22  ;;  %v1100_v27 = vadd.f32 %v1099_v23, %v2884_v17  ;;  %1287 = vmatprep.mubr.f32.mxu1 %v1163_v42  ;;  %1417 = vmatprep.mubr.f32.mxu0 %v1165_v46 }
 0x31b   : > { %1288 = vmatmul.mubr.f32.gmra.mrb[32].mxu1 %v1162_v19  ;;  %1418 = vmatmul.mubr.f32.gmra.mrb[58].mxu0 %v1164_v38  ;;  %v1166_v33 = vmax.f32 %v955_v18, 0.0  ;;  %v1168_v21 = vmax.f32 %v1098_v16, 0.0 }
 0x31c   : > { %v1167_v49 = vmax.f32 %v957_v31, 0.0  ;;  %v1169_v32 = vmax.f32 %v1100_v27, 0.0  ;;  %v960_v34 = vpop.f32.mrb[10].mxu1  ;;  %v1103_v55 = vpop.f32.mrb[36].mxu0  ;;  %2017 = vmatpush3.bf16.msra.mxu1 %v2731_v54 }
 0x31d   : > { %v961_v36 = vadd.f32 %v960_v34, %v2878_v12  ;;  %v1104_v35 = vadd.f32 %v1103_v55, %v2880_v13  ;;  %v962_v14 = vpop.f32.mrb[11].mxu1  ;;  %v1105_v39 = vpop.f32.mrb[37].mxu0  ;;  %2010 = vmatprep.subr.bf16.mxu1 %v2737_v57 }
 0x31e   : > { %v963_v41 = vadd.f32 %v962_v14, %v2882_v22  ;;  %v1106_v40 = vadd.f32 %v1105_v39, %v2884_v17  ;;  %1292 = vmatprep.mubr.f32.mxu1 %v1167_v49  ;;  %1422 = vmatprep.mubr.f32.mxu0 %v1169_v32 }
 0x31f   : > { %1293 = vmatmul.mubr.f32.gmra.mrb[34].mxu1 %v1166_v33  ;;  %1423 = vmatmul.mubr.f32.gmra.mrb[60].mxu0 %v1168_v21  ;;  %v1170_v47 = vmax.f32 %v961_v36, 0.0  ;;  %v1172_v24 = vmax.f32 %v1104_v35, 0.0 }
 0x320   : > { %v1171_v20 = vmax.f32 %v963_v41, 0.0  ;;  %v1173_v54 = vmax.f32 %v1106_v40, 0.0  ;;  %v966_v44 = vpop.f32.mrb[12].mxu1  ;;  %v1109_v45 = vpop.f32.mrb[38].mxu0  ;;  %2018 = vmatpush3.bf16.msra.mxu1 %v2765_v7 }
 0x321   : > { %v967_v48 = vadd.f32 %v966_v44, %v2878_v12  ;;  %v1110_v57 = vadd.f32 %v1109_v45, %v2880_v13  ;;  %v968_v29 = vpop.f32.mrb[13].mxu1  ;;  %v1111_v50 = vpop.f32.mrb[39].mxu0  ;;  %2011 = vmatprep.subr.bf16.mxu1 %v2771_v9 }
 0x322   : > { %v969_v30 = vadd.f32 %v968_v29, %v2882_v22  ;;  %v1112_v51 = vadd.f32 %v1111_v50, %v2884_v17  ;;  %1297 = vmatprep.mubr.f32.mxu1 %v1171_v20  ;;  %1427 = vmatprep.mubr.f32.mxu0 %v1173_v54 }
 0x323   : > { %1298 = vmatmul.mubr.f32.gmra.mrb[36].mxu1 %v1170_v47  ;;  %1428 = vmatmul.mubr.f32.gmra.mrb[62].mxu0 %v1172_v24  ;;  %v1174_v37 = vmax.f32 %v967_v48, 0.0  ;;  %v1176_v26 = vmax.f32 %v1110_v57, 0.0 }
 0x324   : > { %v1175_v52 = vmax.f32 %v969_v30, 0.0  ;;  %v1177_v7 = vmax.f32 %v1112_v51, 0.0  ;;  %v972_v56 = vpop.f32.mrb[14].mxu1  ;;  %v2924_v6 = vpop.f32.mrb[40].mxu0  ;;  %2019 = vmatpush3.bf16.msra.mxu1 %v2793_v28 }
 0x325   : > { %v973_v61 = vadd.f32 %v972_v56, %v2878_v12  ;;  %v974_v9 = vpop.f32.mrb[15].mxu1  ;;  %v1117_v58 = vpop.f32.mrb[41].mxu0  ;;  %2012 = vmatprep.subr.bf16.mxu1 %v2802_v62  ;;  %v1116_v50 = vadd.f32 %v2924_v6, %v2880_v13 }
 0x326   : > { %v975_v59 = vadd.f32 %v974_v9, %v2882_v22  ;;  %1302 = vmatprep.mubr.f32.mxu1 %v1175_v52  ;;  %1432 = vmatprep.mubr.f32.mxu0 %v1177_v7  ;;  %v1118_v24 = vadd.f32 %v1117_v58, %v2884_v17 }
 0x327   : > { %1303 = vmatmul.mubr.f32.gmra.mrb[38].mxu1 %v1174_v37  ;;  %1433 = vmatmul.mubr.f32.gmra.mrb[64].mxu0 %v1176_v26  ;;  %v1178_v28 = vmax.f32 %v973_v61, 0.0  ;;  %v1180_v52 = vmax.f32 %v1116_v50, 0.0 }
 0x328   : > { %v1179_v60 = vmax.f32 %v975_v59, 0.0  ;;  %v978_v43 = vpop.f32.mrb[16].mxu1  ;;  %v2930_v0 = vpop.f32.mrb[42].mxu0  ;;  %2020 = vmatpush3.bf16.msra.mxu1 %v2841_v53  ;;  %v1181_v51 = vmax.f32 %v1118_v24, 0.0 }
 0x329   : > { %v979_v15 = vadd.f32 %v978_v43, %v2878_v12  ;;  %v980_v1 = vpop.f32.mrb[17].mxu1  ;;  %v1123_v3 = vpop.f32.mrb[43].mxu0  ;;  %2013 = vmatprep.subr.bf16.mxu1 %v2862_v63  ;;  %v1122_v7 = vadd.f32 %v2930_v0, %v2880_v13 }
 0x32a   : > { %v981_v62 = vadd.f32 %v980_v1, %v2882_v22  ;;  %1307 = vmatprep.mubr.f32.mxu1 %v1179_v60 }
 0x32b   : > { %1308 = vmatmul.mubr.f32.gmra.mrb[40].mxu1 %v1178_v28  ;;  %v1182_v42 = vmax.f32 %v979_v15, 0.0  ;;  %v1184_v37 = vmax.f32 %v1122_v7, 0.0 }
 0x32c   : > { %v1183_v4 = vmax.f32 %v981_v62, 0.0  ;;  %v984_v5 = vpop.f32.mrb[18].mxu1  ;;  %v1127_v8 = vpop.f32.mrb[44].mxu0  ;;  %2021 = vmatpush3.bf16.msra.mxu1 %v2870_v2 }
 0x32d   : > { %v985_v46 = vadd.f32 %v984_v5, %v2878_v12  ;;  %v986_v53 = vpop.f32.mrb[19].mxu1  ;;  %v1129_v10 = vpop.f32.mrb[45].mxu0  ;;  %v1128_v26 = vadd.f32 %v1127_v8, %v2880_v13 }
 0x32e   : > { %v987_v11 = vadd.f32 %v986_v53, %v2882_v22  ;;  %1312 = vmatprep.mubr.f32.mxu1 %v1183_v4  ;;  %v1130_v56 = vadd.f32 %v1129_v10, %v2884_v17 }
 0x32f   : > { %1313 = vmatmul.mubr.f32.gmra.mrb[42].mxu1 %v1182_v42  ;;  %v1186_v18 = vmax.f32 %v985_v46, 0.0  ;;  %v1188_v9 = vmax.f32 %v1128_v26, 0.0 }
 0x330   : > { %v1187_v19 = vmax.f32 %v987_v11, 0.0  ;;  %v990_v63 = vpop.f32.mrb[20].mxu1  ;;  %v1133_v38 = vpop.f32.mrb[46].mxu0  ;;  %v1189_v6 = vmax.f32 %v1130_v56, 0.0 }
 0x331   : > { %v991_v16 = vadd.f32 %v990_v63, %v2878_v12  ;;  %v1134_v25 = vadd.f32 %v1133_v38, %v2880_v13  ;;  %v992_v23 = vpop.f32.mrb[21].mxu1  ;;  %v1135_v31 = vpop.f32.mrb[47].mxu0 }
 0x332   : > { %v993_v2 = vadd.f32 %v992_v23, %v2882_v22  ;;  %1317 = vmatprep.mubr.f32.mxu1 %v1187_v19  ;;  %v1136_v61 = vadd.f32 %v1135_v31, %v2884_v17 }
 0x333   : > { %1318 = vmatmul.mubr.f32.gmra.mrb[44].mxu1 %v1186_v18  ;;  %v1190_v34 = vmax.f32 %v991_v16, 0.0  ;;  %v1192_v59 = vmax.f32 %v1134_v25, 0.0 }
 0x334   : > { %v1191_v27 = vmax.f32 %v993_v2, 0.0  ;;  %v996_v49 = vpop.f32.mrb[22].mxu1  ;;  %v1139_v32 = vpop.f32.mrb[48].mxu0  ;;  %v1193_v58 = vmax.f32 %v1136_v61, 0.0 }
 0x335   : > { %v997_v55 = vadd.f32 %v996_v49, %v2878_v12  ;;  %v1140_v33 = vadd.f32 %v1139_v32, %v2880_v13  ;;  %v998_v21 = vpop.f32.mrb[23].mxu1  ;;  %v1141_v36 = vpop.f32.mrb[49].mxu0 }
 0x336   : > { %v999_v35 = vadd.f32 %v998_v21, %v2882_v22  ;;  %v1142_v14 = vadd.f32 %v1141_v36, %v2884_v17  ;;  %1322 = vmatprep.mubr.f32.mxu1 %v1191_v27 }
 0x337   : > { %1323 = vmatmul.mubr.f32.gmra.mrb[46].mxu1 %v1190_v34  ;;  %v1194_v20 = vmax.f32 %v997_v55, 0.0  ;;  %v1196_v43 = vmax.f32 %v1140_v33, 0.0 }
 0x338   : > { %v1195_v39 = vmax.f32 %v999_v35, 0.0  ;;  %v1002_v41 = vpop.f32.mrb[24].mxu1  ;;  %v1145_v40 = vpop.f32.mrb[50].mxu0  ;;  %v1197_v60 = vmax.f32 %v1142_v14, 0.0 }
 0x339   : > { %v1003_v54 = vadd.f32 %v1002_v41, %v2878_v12  ;;  %v1146_v44 = vadd.f32 %v1145_v40, %v2880_v13  ;;  %v1004_v45 = vpop.f32.mrb[25].mxu1  ;;  %v1147_v47 = vpop.f32.mrb[51].mxu0  ;;  %v1124_v12 = vadd.f32 %v1123_v3, %v2884_v17 }
 0x33a   : > { %v1005_v48 = vadd.f32 %v1004_v45, %v2882_v22  ;;  %v1148_v57 = vadd.f32 %v1147_v47, %v2884_v17  ;;  %1327 = vmatprep.mubr.f32.mxu1 %v1195_v39  ;;  %v2962_v17 = vld [vmem:[%s3020_s8] ss:$0 sm:$0xff] }
 0x33b   : > { %1328 = vmatmul.mubr.f32.gmra.mrb[48].mxu1 %v1194_v20  ;;  %v1198_v30 = vmax.f32 %v1003_v54, 0.0  ;;  %v1185_v22 = vmax.f32 %v1124_v12, 0.0  ;;  %v1200_v28 = vmax.f32 %v1146_v44, 0.0 }
 0x33c   : > { %v1199_v29 = vmax.f32 %v1005_v48, 0.0  ;;  %v1201_v0 = vmax.f32 %v1148_v57, 0.0 }
 0x33e   : > { %1332 = vmatprep.mubr.f32.mxu1 %v1199_v29 }
 0x33f   : > { %1333 = vmatmul.mubr.f32.gmra.mrb[50].mxu1 %v1198_v30 }
 0x340   : > { %1437 = vmatprep.mubr.f32.mxu1 %v1181_v51 }
 0x343   : > { %1438 = vmatmul.mubr.f32.vlgmr.msra.gmra.mrb[52].mxu1 %v1180_v52 }
 0x344   : > { %1442 = vmatprep.mubr.f32.mxu1 %v1185_v22 }
 0x347   : > { %1443 = vmatmul.mubr.f32.gmra.mrb[54].mxu1 %v1184_v37 }
 0x348   : > { %1447 = vmatprep.mubr.f32.mxu1 %v1189_v6 }
 0x34b   : > { %1448 = vmatmul.mubr.f32.gmra.mrb[56].mxu1 %v1188_v9 }
 0x34c   : > { %1452 = vmatprep.mubr.f32.mxu1 %v1193_v58 }
 0x34f   : > { %1453 = vmatmul.mubr.f32.gmra.mrb[58].mxu1 %v1192_v59 }
 0x350   : > { %1457 = vmatprep.mubr.f32.mxu1 %v1197_v60 }
 0x353   : > { %1458 = vmatmul.mubr.f32.gmra.mrb[60].mxu1 %v1196_v43 }
 0x354   : > { %1462 = vmatprep.mubr.f32.mxu1 %v1201_v0 }
 0x357   : > { %1463 = vmatmul.mubr.f32.gmra.mrb[62].mxu1 %v1200_v28 }
 0x3e2   : > { %v1673_v13 = vpop.f32.mrb[26].mxu1  ;;  %v1744_v15 = vpop.f32.mrb[52].mxu0 }
 0x3e3   : > { %v1674_v1 = vpop.f32.mrb[27].mxu1  ;;  %v1745_v3 = vpop.f32.mrb[53].mxu0 }
 0x3e4   : > { %v1675_v62 = vadd.f32 %v1674_v1, %v1673_v13  ;;  %v1746_v4 = vadd.f32 %v1745_v3, %v1744_v15 }
 0x3e6   : > { %v1275_v5 = vadd.f32 %v1675_v62, %v2962_v17  ;;  %v1676_v8 = vpop.f32.mrb[28].mxu1  ;;  %v1747_v42 = vpop.f32.mrb[54].mxu0 }
 0x3e7   : > { %v1677_v46 = vpop.f32.mrb[29].mxu1  ;;  %v1748_v53 = vpop.f32.mrb[55].mxu0 }
 0x3e8   : > { %v1405_v10 = vadd.f32 %v1746_v4, %v1275_v5  ;;  %v1678_v11 = vadd.f32 %v1677_v46, %v1676_v8  ;;  %v1749_v19 = vadd.f32 %v1748_v53, %v1747_v42 }
 0x3ea   : > { %v1468_v63 = vmax.f32 %v1405_v10, 0.0  ;;  %v1280_v38 = vadd.f32 %v1678_v11, %v2962_v17  ;;  %v1679_v18 = vpop.f32.mrb[30].mxu1  ;;  %v1750_v16 = vpop.f32.mrb[56].mxu0 }
 0x3eb   : > { %v1680_v25 = vpop.f32.mrb[31].mxu1  ;;  %v1751_v23 = vpop.f32.mrb[57].mxu0 }
 0x3ec   : > { %1482 = vst.msk [vmem:[%s2969_s11] sm:$0xff] %vm1481_vm1, %v1468_v63  ;;  %v1410_v31 = vadd.f32 %v1749_v19, %v1280_v38  ;;  %v1681_v2 = vadd.f32 %v1680_v25, %v1679_v18  ;;  %v1752_v27 = vadd.f32 %v1751_v23, %v1750_v16 }
 0x3ee   : > { %v1469_v49 = vmax.f32 %v1410_v31, 0.0  ;;  %v1285_v32 = vadd.f32 %v1681_v2, %v2962_v17  ;;  %v1682_v34 = vpop.f32.mrb[32].mxu1  ;;  %v1753_v55 = vpop.f32.mrb[58].mxu0 }
 0x3ef   : > { %v1683_v33 = vpop.f32.mrb[33].mxu1  ;;  %v1754_v21 = vpop.f32.mrb[59].mxu0 }
 0x3f0   : > { %1483 = vst.msk [vmem:[%s2969_s11 + $0x8] sm:$0xff] %vm1481_vm1, %v1469_v49  ;;  %v1415_v36 = vadd.f32 %v1752_v27, %v1285_v32  ;;  %v1684_v35 = vadd.f32 %v1683_v33, %v1682_v34  ;;  %v1755_v14 = vadd.f32 %v1754_v21, %v1753_v55 }
 0x3f2   : > { %v1470_v39 = vmax.f32 %v1415_v36, 0.0  ;;  %v1290_v41 = vadd.f32 %v1684_v35, %v2962_v17  ;;  %v1685_v40 = vpop.f32.mrb[34].mxu1  ;;  %v1756_v20 = vpop.f32.mrb[60].mxu0 }
 0x3f3   : > { %v1686_v54 = vpop.f32.mrb[35].mxu1  ;;  %v1757_v44 = vpop.f32.mrb[61].mxu0 }
 0x3f4   : > { %1484 = vst.msk [vmem:[%s2969_s11 + $0x10] sm:$0xff] %vm1481_vm1, %v1470_v39  ;;  %v1420_v45 = vadd.f32 %v1755_v14, %v1290_v41  ;;  %v1687_v47 = vadd.f32 %v1686_v54, %v1685_v40  ;;  %v1758_v24 = vadd.f32 %v1757_v44, %v1756_v20 }
 0x3f6   : > { %v1471_v48 = vmax.f32 %v1420_v45, 0.0  ;;  %v1295_v57 = vadd.f32 %v1687_v47, %v2962_v17  ;;  %v1688_v29 = vpop.f32.mrb[36].mxu1  ;;  %v1759_v50 = vpop.f32.mrb[62].mxu0 }
 0x3f7   : > { %v1689_v30 = vpop.f32.mrb[37].mxu1  ;;  %v1760_v51 = vpop.f32.mrb[63].mxu0 }
 0x3f8   : > { %1485 = vst.msk [vmem:[%s2969_s11 + $0x18] sm:$0xff] %vm1481_vm1, %v1471_v48  ;;  %v1425_v12 = vadd.f32 %v1758_v24, %v1295_v57  ;;  %v1690_v52 = vadd.f32 %v1689_v30, %v1688_v29  ;;  %v1761_v7 = vadd.f32 %v1760_v51, %v1759_v50 }
 0x3fa   : > { %v1472_v22 = vmax.f32 %v1425_v12, 0.0  ;;  %v1300_v56 = vadd.f32 %v1690_v52, %v2962_v17  ;;  %v1691_v37 = vpop.f32.mrb[38].mxu1  ;;  %v1762_v26 = vpop.f32.mrb[64].mxu0 }
 0x3fb   : > { %v1692_v6 = vpop.f32.mrb[39].mxu1  ;;  %v1763_v61 = vpop.f32.mrb[65].mxu0 }
 0x3fc   : > { %1486 = vst.msk [vmem:[%s2969_s11 + $0x20] sm:$0xff] %vm1481_vm1, %v1472_v22  ;;  %v1430_v9 = vadd.f32 %v1761_v7, %v1300_v56  ;;  %v1693_v58 = vadd.f32 %v1692_v6, %v1691_v37  ;;  %v1764_v59 = vadd.f32 %v1763_v61, %v1762_v26 }
 0x3fe   : > { %v1473_v60 = vmax.f32 %v1430_v9, 0.0  ;;  %v1305_v43 = vadd.f32 %v1693_v58, %v2962_v17  ;;  %v1694_v0 = vpop.f32.mrb[40].mxu1 }
 0x3ff   : > { %v1695_v28 = vpop.f32.mrb[41].mxu1 }
 0x400   : > { %1487 = vst.msk [vmem:[%s2969_s11 + $0x28] sm:$0xff] %vm1481_vm1, %v1473_v60  ;;  %v1435_v13 = vadd.f32 %v1764_v59, %v1305_v43  ;;  %v1696_v15 = vadd.f32 %v1695_v28, %v1694_v0 }
 0x402   : > { %v1474_v1 = vmax.f32 %v1435_v13, 0.0  ;;  %v1697_v3 = vpop.f32.mrb[42].mxu1  ;;  %v1310_v27 = vadd.f32 %v1696_v15, %v2962_v17 }
 0x403   : > { %v1698_v62 = vpop.f32.mrb[43].mxu1 }
 0x404   : > { %1488 = vst.msk [vmem:[%s2969_s11 + $0x30] sm:$0xff] %vm1481_vm1, %v1474_v1  ;;  %v1699_v4 = vadd.f32 %v1698_v62, %v1697_v3 }
 0x406   : > { %v1700_v5 = vpop.f32.mrb[44].mxu1  ;;  %v1315_v33 = vadd.f32 %v1699_v4, %v2962_v17 }
 0x407   : > { %v1701_v8 = vpop.f32.mrb[45].mxu1 }
 0x408   : > { %v1702_v42 = vadd.f32 %v1701_v8, %v1700_v5 }
 0x40a   : > { %v1703_v46 = vpop.f32.mrb[46].mxu1  ;;  %v1320_v41 = vadd.f32 %v1702_v42, %v2962_v17 }
 0x40b   : > { %v1704_v53 = vpop.f32.mrb[47].mxu1 }
 0x40c   : > { %v1705_v10 = vadd.f32 %v1704_v53, %v1703_v46 }
 0x40e   : > { %v1706_v11 = vpop.f32.mrb[48].mxu1  ;;  %v1325_v47 = vadd.f32 %v1705_v10, %v2962_v17 }
 0x40f   : > { %v1707_v19 = vpop.f32.mrb[49].mxu1 }
 0x410   : > { %v1708_v63 = vadd.f32 %v1707_v19, %v1706_v11 }
 0x412   : > { %v1330_v38 = vadd.f32 %v1708_v63, %v2962_v17  ;;  %v1709_v18 = vpop.f32.mrb[50].mxu1 }
 0x413   : > { %v1710_v16 = vpop.f32.mrb[51].mxu1 }
 0x414   : > { %v1711_v25 = vadd.f32 %v1710_v16, %v1709_v18 }
 0x416   : > { %v1335_v23 = vadd.f32 %v1711_v25, %v2962_v17  ;;  %v1765_v31 = vpop.f32.mrb[52].mxu1 }
 0x417   : > { %v1766_v2 = vpop.f32.mrb[53].mxu1 }
 0x418   : > { %v1767_v49 = vadd.f32 %v1766_v2, %v1765_v31 }
 0x41a   : > { %v1440_v32 = vadd.f32 %v1767_v49, %v1310_v27  ;;  %v1768_v34 = vpop.f32.mrb[54].mxu1 }
 0x41b   : > { %v1769_v55 = vpop.f32.mrb[55].mxu1 }
 0x41c   : > { %v1475_v21 = vmax.f32 %v1440_v32, 0.0  ;;  %v1770_v36 = vadd.f32 %v1769_v55, %v1768_v34 }
 0x41e   : > { %1489 = vst.msk [vmem:[%s2969_s11 + $0x38] sm:$0xff] %vm1481_vm1, %v1475_v21  ;;  %v1445_v35 = vadd.f32 %v1770_v36, %v1315_v33  ;;  %v1771_v14 = vpop.f32.mrb[56].mxu1 }
 0x41f   : > { %v1772_v39 = vpop.f32.mrb[57].mxu1 }
 0x420   : > { %v1476_v40 = vmax.f32 %v1445_v35, 0.0  ;;  %v1773_v20 = vadd.f32 %v1772_v39, %v1771_v14 }
 0x422   : > { %1490 = vst.msk [vmem:[%s2969_s11 + $0x40] sm:$0xff] %vm1481_vm1, %v1476_v40  ;;  %v1450_v54 = vadd.f32 %v1773_v20, %v1320_v41  ;;  %v1774_v44 = vpop.f32.mrb[58].mxu1 }
 0x423   : > { %v1775_v45 = vpop.f32.mrb[59].mxu1 }
 0x424   : > { %v1477_v24 = vmax.f32 %v1450_v54, 0.0  ;;  %v1776_v48 = vadd.f32 %v1775_v45, %v1774_v44 }
 0x426   : > { %1491 = vst.msk [vmem:[%s2969_s11 + $0x48] sm:$0xff] %vm1481_vm1, %v1477_v24  ;;  %v1455_v57 = vadd.f32 %v1776_v48, %v1325_v47  ;;  %v1777_v29 = vpop.f32.mrb[60].mxu1 }
 0x427   : > { %v1778_v50 = vpop.f32.mrb[61].mxu1 }
 0x428   : > { %v1478_v30 = vmax.f32 %v1455_v57, 0.0  ;;  %v1779_v51 = vadd.f32 %v1778_v50, %v1777_v29 }
 0x42a   : > { %1492 = vst.msk [vmem:[%s2969_s11 + $0x50] sm:$0xff] %vm1481_vm1, %v1478_v30  ;;  %v1460_v12 = vadd.f32 %v1779_v51, %v1330_v38  ;;  %v1780_v52 = vpop.f32.mrb[62].mxu1 }
 0x42b   : > { %v1781_v7 = vpop.f32.mrb[63].mxu1 }
 0x42c   : > { %v1479_v22 = vmax.f32 %v1460_v12, 0.0  ;;  %v1782_v56 = vadd.f32 %v1781_v7, %v1780_v52 }
 0x42e   : > { %1493 = vst.msk [vmem:[%s2969_s11 + $0x58] sm:$0xff] %vm1481_vm1, %v1479_v22  ;;  %v1465_v17 = vadd.f32 %v1782_v56, %v1335_v23 }
 0x430   : > { %v1480_v37 = vmax.f32 %v1465_v17, 0.0 }
 0x432   : > { %1494 = vst.msk [vmem:[%s2969_s11 + $0x60] sm:$0xff] %vm1481_vm1, %v1480_v37 }
 0x433 PF: > { %s21_s13 = sadd.s32 1, %s2091_s13  }
 0x434   : > { %p18_p4 = scmp.ge.s32.totalorder %s21_s13, 5  }
 0x436   :  { %20 = sbr.rel (!%p18_p4) target bundleno = 1 (0x1), region = 98 }

</bundles_post_ra>
